<compile_context>
chip_gen: v7x
topology: tpu7x:2x2x1
jax: 0.10.0
libtpu: 0.0.40
codegen_flags: <defaults>
</compile_context>

<pallas_src>
import jax
import jax.numpy as jnp
from jax.experimental import pallas as pl
from jax.experimental.pallas import tpu as pltpu


def _mul_conv1x1_kernel(w_ref, x_ref, s_ref, o_ref):
    # w_ref: (N, K)  out-channels x in-channels, bf16 (MXU operand)
    # x_ref: (K, M)  in-channels x pixels, f32
    # s_ref: (K, 1)  per-in-channel scale, f32 (broadcast across lanes)
    # o_ref: (N, M)  out-channels x pixels, f32
    x_scaled = (x_ref[...] * s_ref[...]).astype(jnp.bfloat16)
    o_ref[...] = jnp.dot(w_ref[...], x_scaled,
                         preferred_element_type=jnp.float32)


def mul_conv1x1(x_nchw, scale_nc11, weight_oihw):
    """Fused (x * scale) followed by 1x1 conv (no bias). Assumes batch == 1."""
    n, c_in, h, w = x_nchw.shape
    c_out = weight_oihw.shape[0]
    assert n == 1, "kernel written for batch=1 (matches the reference module)"
    m = n * h * w
    k = c_in

    # Pure-view reshapes — no transposes anywhere on the per-call path.
    x2d = x_nchw.reshape(k, m)                                  # (960, 49)
    s2d = scale_nc11.reshape(k, 1)                              # (960, 1)
    # Conv weight is a static parameter: the cast/reshape would happen once at
    # parameter-load time in a real model; it's still transpose-free here.
    w2d = weight_oihw.reshape(c_out, k).astype(jnp.bfloat16)    # (272, 960) bf16

    bytes_accessed = (w2d.size * 2          # bf16 weight stream
                      + x2d.size * 4        # f32 activations
                      + s2d.size * 4        # f32 scale
                      + c_out * m * 4)      # f32 output
    cost = pl.CostEstimate(flops=2 * m * k * c_out,
                           bytes_accessed=bytes_accessed,
                           transcendentals=0)

    out2d = pl.pallas_call(
        _mul_conv1x1_kernel,
        out_shape=jax.ShapeDtypeStruct((c_out, m), jnp.float32),
        in_specs=[
            pl.BlockSpec((c_out, k), lambda: (0, 0),
                         memory_space=pltpu.MemorySpace.VMEM),
            pl.BlockSpec((k, m), lambda: (0, 0),
                         memory_space=pltpu.MemorySpace.VMEM),
            pl.BlockSpec((k, 1), lambda: (0, 0),
                         memory_space=pltpu.MemorySpace.VMEM),
        ],
        out_specs=pl.BlockSpec((c_out, m), lambda: (0, 0),
                               memory_space=pltpu.MemorySpace.VMEM),
        cost_estimate=cost,
    )(w2d, x2d, s2d)

    # Pure-view reshape back to NCHW.
    return out2d.reshape(n, c_out, h, w)                        # (1, 272, 7, 7)


if __name__ == "__main__":
    key = jax.random.PRNGKey(0)
    k1, k2, k3 = jax.random.split(key, 3)

    # Shapes implied by the module's forward pass.
    x330 = jax.random.normal(k1, (1, 960, 7, 7), dtype=jnp.float32)
    x335 = jax.random.normal(k2, (1, 960, 1, 1), dtype=jnp.float32)
    # Conv2d(960, 272, 1, bias=False) weight, deterministic init.
    w = jax.random.normal(k3, (272, 960, 1, 1), dtype=jnp.float32) * 0.02

    out = mul_conv1x1(x330, x335, w)
    out = jax.block_until_ready(out)

    # Reference check (plain JAX, f32): 1x1 conv == einsum over channels.
    # Tolerance loosened vs pure-f32 because the MXU operands are bf16
    # (with f32 accumulation); observed relative error is well under 1%.
    ref = jnp.einsum("nchw,oc->nohw", x330 * x335, w.reshape(272, 960))
    assert out.shape == (1, 272, 7, 7)
    assert jnp.allclose(out, ref, atol=3e-2, rtol=3e-2), "mismatch vs reference"

    print("KERNEL_OK")
</pallas_src>

<mosaic_0001>
module attributes {stable_mosaic.version = 11 : i64} {
  func.func @_mul_conv1x1_kernel(%arg0: memref<272x960xbf16, #tpu.memory_space<vmem>>, %arg1: memref<960x49xf32, #tpu.memory_space<vmem>>, %arg2: memref<960x1xf32, #tpu.memory_space<vmem>>, %arg3: memref<272x49xf32, #tpu.memory_space<vmem>>) attributes {dimension_semantics = [], scalar_prefetch = 0 : i64, scratch_operands = 0 : i64, tpu.core_type = #tpu.core_type<tc>} {
    %c0 = arith.constant 0 : index
    %c0_0 = arith.constant 0 : index
    %0 = vector.load %arg1[%c0, %c0_0] : memref<960x49xf32, #tpu.memory_space<vmem>>, vector<960x49xf32>
    %c0_1 = arith.constant 0 : index
    %c0_2 = arith.constant 0 : index
    %1 = vector.load %arg2[%c0_1, %c0_2] : memref<960x1xf32, #tpu.memory_space<vmem>>, vector<960x1xf32>
    %2 = vector.broadcast %1 : vector<960x1xf32> to vector<960x49xf32>
    %3 = arith.mulf %0, %2 : vector<960x49xf32>
    %4 = arith.truncf %3 : vector<960x49xf32> to vector<960x49xbf16>
    %c0_3 = arith.constant 0 : index
    %c0_4 = arith.constant 0 : index
    %5 = vector.load %arg0[%c0_3, %c0_4] : memref<272x960xbf16, #tpu.memory_space<vmem>>, vector<272x960xbf16>
    %cst = arith.constant dense<0.000000e+00> : vector<272x49xf32>
    %6 = tpu.matmul %5, %4, %cst {dimension_numbers = #tpu.dot_dimension_numbers<[1], [0], [0], [1], [0, 0, 1, 1], [], []>} : vector<272x960xbf16>, vector<960x49xbf16>, vector<272x49xf32> -> vector<272x49xf32>
    %c0_5 = arith.constant 0 : index
    %c0_6 = arith.constant 0 : index
    %7 = vector.load %arg3[%c0_5, %c0_6] : memref<272x49xf32, #tpu.memory_space<vmem>>, vector<272x49xf32>
    tpu.vector_store %arg3[%c0_5, %c0_6], %6 {strides = array<i32>} : memref<272x49xf32, #tpu.memory_space<vmem>>, vector<272x49xf32>,
    return
  }
}

</mosaic_0001>

<bundles_post_ra>
// kernel: tpu_custom_call.1
= control target key start
LH: loop header
LB: loop body
LE: loop exit
PB: predicated region body
PF: predicated region fallthrough
CT: control target
= control target key end

     0   :  { %v2927_v0 = vmov 0   ;;  %vm1834_vm0 = vcmask 523264   ;;  %vm2562_vm1 = vcmask 400384   ;;  %s4313_s2 = inlined_call_operand.vmem [shape: f32[960,1], index: 2, kind: input, shape index: {}]   ;;  %s4314_s0 = inlined_call_operand.vmem [shape: bf16[272,960], index: 0, kind: input, shape index: {}]   ;;  %s4315_s1 = inlined_call_operand.vmem [shape: f32[960,49], index: 1, kind: input, shape index: {}]   ;;  %s4316_s3 = inlined_call_operand.vmem [shape: f32[272,49], index: 3, kind: output, shape index: {}]  }
   0x1   :  { %2926 = vset.pattern.permute.xlu1 %v2927_v0  ;;  %2925 = vset.pattern.permute.xlu0 %v2927_v0  ;;  %v199_v1 = vld [vmem:[%s4313_s2 + $0x200] sm:$0xff]  ;;  %v200_v3 = vld [vmem:[%s4313_s2 + $0x208] sm:$0xff]  ;;  %v138_v5 = vld [vmem:[%s4313_s2 + $0x18] sm:$0xff] }
   0x2   :  { %v135_v2 = vld [vmem:[%s4313_s2] sm:$0xff]  ;;  %577 = vperm.xlu1 %2926, %v199_v1   ;;  %v136_v4 = vld [vmem:[%s4313_s2 + $0x8] sm:$0xff]  ;;  %1886 = vmatprep.subr.bf16.mxu1 %v2927_v0  ;;  %v137_v6 = vld [vmem:[%s4313_s2 + $0x10] sm:$0xff] }
   0x3   :  { %257 = vperm.xlu0 %2925, %v135_v2   ;;  %2224 = vmatprep.subr.bf16.mxu0 %v2927_v0  ;;  %v202_v7 = vld [vmem:[%s4313_s2 + $0x218] sm:$0xff]  ;;  %v201_v8 = vld [vmem:[%s4313_s2 + $0x210] sm:$0xff]  ;;  %v140_v9 = vld [vmem:[%s4313_s2 + $0x28] sm:$0xff] }
   0x4   :  { %v139_v10 = vld [vmem:[%s4313_s2 + $0x20] sm:$0xff]  ;;  %v204_v11 = vld [vmem:[%s4313_s2 + $0x228] sm:$0xff]  ;;  %v142_v13 = vld [vmem:[%s4313_s2 + $0x38] sm:$0xff] }
   0x5   :  { %v203_v12 = vld [vmem:[%s4313_s2 + $0x220] sm:$0xff]  ;;  %v141_v14 = vld [vmem:[%s4313_s2 + $0x30] sm:$0xff]  ;;  %v206_v15 = vld [vmem:[%s4313_s2 + $0x238] sm:$0xff] }
   0x6   :  { %582 = vperm.xlu1 %2926, %v200_v3   ;;  %v205_v16 = vld [vmem:[%s4313_s2 + $0x230] sm:$0xff]  ;;  %v144_v17 = vld [vmem:[%s4313_s2 + $0x48] sm:$0xff]  ;;  %v143_v18 = vld [vmem:[%s4313_s2 + $0x40] sm:$0xff] }
   0x7   :  { %262 = vperm.xlu0 %2925, %v136_v4   ;;  %v208_v19 = vld [vmem:[%s4313_s2 + $0x248] sm:$0xff]  ;;  %v207_v20 = vld [vmem:[%s4313_s2 + $0x240] sm:$0xff]  ;;  %v146_v21 = vld [vmem:[%s4313_s2 + $0x58] sm:$0xff] }
   0x8   :  { %v145_v22 = vld [vmem:[%s4313_s2 + $0x50] sm:$0xff]  ;;  %v210_v23 = vld [vmem:[%s4313_s2 + $0x258] sm:$0xff]  ;;  %v148_v25 = vld [vmem:[%s4313_s2 + $0x68] sm:$0xff] }
   0x9   :  { %v209_v24 = vld [vmem:[%s4313_s2 + $0x250] sm:$0xff]  ;;  %v147_v26 = vld [vmem:[%s4313_s2 + $0x60] sm:$0xff]  ;;  %v212_v27 = vld [vmem:[%s4313_s2 + $0x268] sm:$0xff] }
   0xa   :  { %272 = vperm.xlu1 %2926, %v138_v5   ;;  %v211_v28 = vld [vmem:[%s4313_s2 + $0x260] sm:$0xff]  ;;  %v150_v29 = vld [vmem:[%s4313_s2 + $0x78] sm:$0xff]  ;;  %v149_v30 = vld [vmem:[%s4313_s2 + $0x70] sm:$0xff] }
   0xb   :  { %267 = vperm.xlu0 %2925, %v137_v6   ;;  %v214_v31 = vld [vmem:[%s4313_s2 + $0x278] sm:$0xff]  ;;  %v213_v32 = vld [vmem:[%s4313_s2 + $0x270] sm:$0xff]  ;;  %v152_v33 = vld [vmem:[%s4313_s2 + $0x88] sm:$0xff] }
   0xc   :  { %v151_v34 = vld [vmem:[%s4313_s2 + $0x80] sm:$0xff]  ;;  %v216_v35 = vld [vmem:[%s4313_s2 + $0x288] sm:$0xff]  ;;  %v154_v37 = vld [vmem:[%s4313_s2 + $0x98] sm:$0xff] }
   0xd   :  { %v215_v36 = vld [vmem:[%s4313_s2 + $0x280] sm:$0xff]  ;;  %v153_v38 = vld [vmem:[%s4313_s2 + $0x90] sm:$0xff]  ;;  %v218_v39 = vld [vmem:[%s4313_s2 + $0x298] sm:$0xff] }
   0xe   :  { %592 = vperm.xlu1 %2926, %v202_v7   ;;  %v217_v40 = vld [vmem:[%s4313_s2 + $0x290] sm:$0xff]  ;;  %v156_v41 = vld [vmem:[%s4313_s2 + $0xa8] sm:$0xff]  ;;  %v155_v42 = vld [vmem:[%s4313_s2 + $0xa0] sm:$0xff] }
   0xf   :  { %587 = vperm.xlu0 %2925, %v201_v8   ;;  %v220_v43 = vld [vmem:[%s4313_s2 + $0x2a8] sm:$0xff]  ;;  %v219_v44 = vld [vmem:[%s4313_s2 + $0x2a0] sm:$0xff]  ;;  %v158_v45 = vld [vmem:[%s4313_s2 + $0xb8] sm:$0xff] }
  0x10   :  { %v157_v46 = vld [vmem:[%s4313_s2 + $0xb0] sm:$0xff]  ;;  %v222_v47 = vld [vmem:[%s4313_s2 + $0x2b8] sm:$0xff]  ;;  %v160_v49 = vld [vmem:[%s4313_s2 + $0xc8] sm:$0xff] }
  0x11   :  { %v221_v48 = vld [vmem:[%s4313_s2 + $0x2b0] sm:$0xff]  ;;  %v159_v50 = vld [vmem:[%s4313_s2 + $0xc0] sm:$0xff]  ;;  %v224_v51 = vld [vmem:[%s4313_s2 + $0x2c8] sm:$0xff] }
  0x12   :  { %282 = vperm.xlu1 %2926, %v140_v9   ;;  %v223_v52 = vld [vmem:[%s4313_s2 + $0x2c0] sm:$0xff]  ;;  %v162_v53 = vld [vmem:[%s4313_s2 + $0xd8] sm:$0xff]  ;;  %v161_v54 = vld [vmem:[%s4313_s2 + $0xd0] sm:$0xff] }
  0x13   :  { %277 = vperm.xlu0 %2925, %v139_v10   ;;  %v226_v55 = vld [vmem:[%s4313_s2 + $0x2d8] sm:$0xff]  ;;  %v225_v56 = vld [vmem:[%s4313_s2 + $0x2d0] sm:$0xff]  ;;  %v164_v57 = vld [vmem:[%s4313_s2 + $0xe8] sm:$0xff] }
  0x14   :  { %v163_v58 = vld [vmem:[%s4313_s2 + $0xe0] sm:$0xff]  ;;  %v228_v59 = vld [vmem:[%s4313_s2 + $0x2e8] sm:$0xff]  ;;  %v166_v61 = vld [vmem:[%s4313_s2 + $0xf8] sm:$0xff] }
  0x15   :  { %v227_v60 = vld [vmem:[%s4313_s2 + $0x2e0] sm:$0xff]  ;;  %v165_v62 = vld [vmem:[%s4313_s2 + $0xf0] sm:$0xff]  ;;  %v230_v63 = vld [vmem:[%s4313_s2 + $0x2f8] sm:$0xff] }
  0x16   :  { %602 = vperm.xlu1 %2926, %v204_v11   ;;  %v229_v1 = vld [vmem:[%s4313_s2 + $0x2f0] sm:$0xff]  ;;  %v3147_v2 = vld [vmem:[%s4314_s0] sm:$0xff]  ;;  %v168_v4 = vld [vmem:[%s4313_s2 + $0x108] sm:$0xff] }
  0x17   :  { %597 = vperm.xlu0 %2925, %v203_v12   ;;  %v3152_v3 = vld [vmem:[%s4314_s0 + $0x20] sm:$0xff]  ;;  %v80_v12 = vld [vmem:[%s4315_s1 + $0x208] sm:$0xff] }
  0x18   :  { %v167_v5 = vld [vmem:[%s4313_s2 + $0x100] sm:$0xff]  ;;  %v2602_v6 = vcombine.high %v3147_v2, %v3152_v3  ;;  %v2601_v7 = vcombine.low %v3147_v2, %v3152_v3 }
  0x19   :  { %v79_v9 = vld [vmem:[%s4315_s1 + $0x200] sm:$0xff] }
  0x1a   :  { %292 = vperm.xlu1 %2926, %v142_v13   ;;  %v15_v11 = vld [vmem:[%s4315_s1] sm:$0xff]  ;;  %1918 = vmatprep.mubr.bf16.mxu1 %v2602_v6  ;;  %v3176_v13 = vld [vmem:[%s4314_s0 + $0x10] sm:$0xff] }
  0x1b   :  { %287 = vperm.xlu0 %2925, %v141_v14   ;;  %v3181_v14 = vld [vmem:[%s4314_s0 + $0x30] sm:$0xff]  ;;  %v1055_v2 = vld [vmem:[%s4314_s0 + $0xa0] sm:$0xff] }
  0x1e   :  { %612 = vperm.xlu1 %2926, %v206_v15   ;;  %v16_v15 = vld [vmem:[%s4315_s1 + $0x8] sm:$0xff] }
  0x1f   :  { %607 = vperm.xlu0 %2925, %v205_v16   ;;  %v170_v16 = vld [vmem:[%s4313_s2 + $0x118] sm:$0xff] }
  0x22   :  { %302 = vperm.xlu1 %2926, %v144_v17   ;;  %v169_v17 = vld [vmem:[%s4313_s2 + $0x110] sm:$0xff] }
  0x23   :  { %297 = vperm.xlu0 %2925, %v143_v18   ;;  %v2606_v18 = vcombine.high %v3176_v13, %v3181_v14 }
  0x25   :  { %2256 = vmatprep.mubr.bf16.mxu0 %v2606_v18 }
  0x26   :  { %622 = vperm.xlu1 %2926, %v208_v19   ;;  %v2605_v19 = vcombine.low %v3176_v13, %v3181_v14  ;;  %v1053_v13 = vld [vmem:[%s4314_s0 + $0x90] sm:$0xff] }
  0x27   :  { %617 = vperm.xlu0 %2925, %v207_v20   ;;  %v1057_v14 = vld [vmem:[%s4314_s0 + $0xb0] sm:$0xff] }
  0x2a   :  { %312 = vperm.xlu1 %2926, %v146_v21  }
  0x2b   :  { %307 = vperm.xlu0 %2925, %v145_v22  }
  0x2e   :  { %632 = vperm.xlu1 %2926, %v210_v23  }
  0x2f   :  { %627 = vperm.xlu0 %2925, %v209_v24  }
  0x32   :  { %322 = vperm.xlu1 %2926, %v148_v25  }
  0x33   :  { %317 = vperm.xlu0 %2925, %v147_v26   ;;  %v18_v26 = vld [vmem:[%s4315_s1 + $0x18] sm:$0xff] }
  0x36   :  { %642 = vperm.xlu1 %2926, %v212_v27   ;;  %v17_v27 = vld [vmem:[%s4315_s1 + $0x10] sm:$0xff] }
  0x37   :  { %637 = vperm.xlu0 %2925, %v211_v28   ;;  %v172_v28 = vld [vmem:[%s4313_s2 + $0x128] sm:$0xff] }
  0x3a   :  { %332 = vperm.xlu1 %2926, %v150_v29   ;;  %v171_v29 = vld [vmem:[%s4313_s2 + $0x120] sm:$0xff] }
  0x3b   :  { %327 = vperm.xlu0 %2925, %v149_v30  }
  0x3e   :  { %652 = vperm.xlu1 %2926, %v214_v31  }
  0x3f   :  { %647 = vperm.xlu0 %2925, %v213_v32  }
  0x42   :  { %342 = vperm.xlu1 %2926, %v152_v33  }
  0x43   :  { %337 = vperm.xlu0 %2925, %v151_v34  }
  0x46   :  { %662 = vperm.xlu1 %2926, %v216_v35  }
  0x47   :  { %657 = vperm.xlu0 %2925, %v215_v36   ;;  %v82_v36 = vld [vmem:[%s4315_s1 + $0x218] sm:$0xff] }
  0x4a   :  { %352 = vperm.xlu1 %2926, %v154_v37   ;;  %v81_v37 = vld [vmem:[%s4315_s1 + $0x210] sm:$0xff] }
  0x4b   :  { %347 = vperm.xlu0 %2925, %v153_v38   ;;  %v174_v38 = vld [vmem:[%s4313_s2 + $0x138] sm:$0xff] }
  0x4e   :  { %672 = vperm.xlu1 %2926, %v218_v39   ;;  %v173_v39 = vld [vmem:[%s4313_s2 + $0x130] sm:$0xff] }
  0x4f   :  { %667 = vperm.xlu0 %2925, %v217_v40  }
  0x52   :  { %362 = vperm.xlu1 %2926, %v156_v41  }
  0x53   :  { %357 = vperm.xlu0 %2925, %v155_v42  }
  0x56   :  { %682 = vperm.xlu1 %2926, %v220_v43  }
  0x57   :  { %677 = vperm.xlu0 %2925, %v219_v44  }
  0x5a   :  { %372 = vperm.xlu1 %2926, %v158_v45   ;;  %v20_v45 = vld [vmem:[%s4315_s1 + $0x28] sm:$0xff] }
  0x5b   :  { %367 = vperm.xlu0 %2925, %v157_v46   ;;  %v19_v46 = vld [vmem:[%s4315_s1 + $0x20] sm:$0xff] }
  0x5e   :  { %692 = vperm.xlu1 %2926, %v222_v47   ;;  %v176_v47 = vld [vmem:[%s4313_s2 + $0x148] sm:$0xff] }
  0x5f   :  { %687 = vperm.xlu0 %2925, %v221_v48   ;;  %v175_v48 = vld [vmem:[%s4313_s2 + $0x140] sm:$0xff] }
  0x62   :  { %382 = vperm.xlu1 %2926, %v160_v49  }
  0x63   :  { %377 = vperm.xlu0 %2925, %v159_v50  }
  0x66   :  { %702 = vperm.xlu1 %2926, %v224_v51  }
  0x67   :  { %697 = vperm.xlu0 %2925, %v223_v52  }
  0x6a   :  { %392 = vperm.xlu1 %2926, %v162_v53  }
  0x6b   :  { %387 = vperm.xlu0 %2925, %v161_v54   ;;  %v84_v54 = vld [vmem:[%s4315_s1 + $0x228] sm:$0xff] }
  0x6e   :  { %712 = vperm.xlu1 %2926, %v226_v55   ;;  %v83_v55 = vld [vmem:[%s4315_s1 + $0x220] sm:$0xff] }
  0x6f   :  { %707 = vperm.xlu0 %2925, %v225_v56   ;;  %v232_v56 = vld [vmem:[%s4313_s2 + $0x308] sm:$0xff] }
  0x72   :  { %402 = vperm.xlu1 %2926, %v164_v57   ;;  %v231_v57 = vld [vmem:[%s4313_s2 + $0x300] sm:$0xff] }
  0x73   :  { %397 = vperm.xlu0 %2925, %v163_v58  }
  0x76   :  { %722 = vperm.xlu1 %2926, %v228_v59  }
  0x77   :  { %717 = vperm.xlu0 %2925, %v227_v60  }
  0x7a   :  { %412 = vperm.xlu1 %2926, %v166_v61  }
  0x7b   :  { %407 = vperm.xlu0 %2925, %v165_v62  }
  0x7e   :  { %732 = vperm.xlu1 %2926, %v230_v63   ;;  %v22_v63 = vld [vmem:[%s4315_s1 + $0x38] sm:$0xff] }
  0x7f   :  { %727 = vperm.xlu0 %2925, %v229_v1   ;;  %v21_v1 = vld [vmem:[%s4315_s1 + $0x30] sm:$0xff] }
  0x81   :  { %v578_v8 = vpop.permute.xlu1 %577 }
  0x82   :  { %v258_v10 = vpop.permute.xlu0 %257  ;;  %422 = vperm.xlu1 %2926, %v168_v4   ;;  %v919_v20 = vmul.f32 %v578_v8, %v79_v9  ;;  %v178_v4 = vld [vmem:[%s4313_s2 + $0x158] sm:$0xff] }
  0x83   :  { %417 = vperm.xlu0 %2925, %v167_v5   ;;  %v855_v23 = vmul.f32 %v258_v10, %v15_v11  ;;  %v177_v5 = vld [vmem:[%s4313_s2 + $0x150] sm:$0xff] }
  0x85   :  { %v583_v21 = vpop.permute.xlu1 %582 }
  0x86   :  { %v263_v22 = vpop.permute.xlu0 %262  ;;  %v920_v24 = vmul.f32 %v583_v21, %v80_v12  ;;  %432 = vperm.xlu1 %2926, %v170_v16   ;;  %v86_v12 = vld [vmem:[%s4315_s1 + $0x238] sm:$0xff] }
  0x87   :  { %v856_v25 = vmul.f32 %v263_v22, %v16_v15  ;;  %427 = vperm.xlu0 %2925, %v169_v17   ;;  %v85_v15 = vld [vmem:[%s4315_s1 + $0x230] sm:$0xff]  ;;  %v234_v16 = vld [vmem:[%s4313_s2 + $0x318] sm:$0xff] }
  0x88   :  { %v1007_v31 = vpack.c.bf16 %v920_v24, %v919_v20  ;;  %v233_v17 = vld [vmem:[%s4313_s2 + $0x310] sm:$0xff]  ;;  %v24_v24 = vld [vmem:[%s4315_s1 + $0x48] sm:$0xff] }
  0x89   :  { %v975_v30 = vpack.c.bf16 %v856_v25, %v855_v23  ;;  %v273_v32 = vpop.permute.xlu1 %272  ;;  %v23_v25 = vld [vmem:[%s4315_s1 + $0x40] sm:$0xff] }
  0x8a   :  { %v268_v33 = vpop.permute.xlu0 %267  ;;  %v858_v34 = vmul.f32 %v273_v32, %v18_v26  ;;  %442 = vperm.xlu1 %2926, %v172_v28   ;;  %2225 = vmatpush1.bf16.msra.mxu0 %v1007_v31  ;;  %v180_v26 = vld [vmem:[%s4313_s2 + $0x168] sm:$0xff] }
  0x8b   :  { %v857_v35 = vmul.f32 %v268_v33, %v17_v27  ;;  %437 = vperm.xlu0 %2925, %v171_v29   ;;  %1887 = vmatpush1.bf16.msra.mxu1 %v975_v30  ;;  %v179_v27 = vld [vmem:[%s4313_s2 + $0x160] sm:$0xff]  ;;  %v88_v33 = vld [vmem:[%s4315_s1 + $0x248] sm:$0xff] }
  0x8c   :  { %1888 = vmatprep.subr.bf16.mxu1 %v2927_v0  ;;  %2226 = vmatprep.subr.bf16.mxu0 %v2927_v0 }
  0x8d   :  { %v976_v40 = vpack.c.bf16 %v858_v34, %v857_v35  ;;  %v593_v41 = vpop.permute.xlu1 %592  ;;  %v87_v34 = vld [vmem:[%s4315_s1 + $0x240] sm:$0xff]  ;;  %v236_v35 = vld [vmem:[%s4313_s2 + $0x328] sm:$0xff] }
  0x8e   :  { %v588_v42 = vpop.permute.xlu0 %587  ;;  %v922_v43 = vmul.f32 %v593_v41, %v82_v36  ;;  %452 = vperm.xlu1 %2926, %v174_v38   ;;  %v235_v36 = vld [vmem:[%s4313_s2 + $0x320] sm:$0xff] }
  0x8f   :  { %v921_v44 = vmul.f32 %v588_v42, %v81_v37  ;;  %447 = vperm.xlu0 %2925, %v173_v39   ;;  %1889 = vmatpush1.bf16.msra.mxu1 %v976_v40  ;;  %v26_v42 = vld [vmem:[%s4315_s1 + $0x58] sm:$0xff] }
  0x90   :  { %1890 = vmatprep.subr.bf16.mxu1 %v2927_v0 }
  0x91   :  { %v1008_v49 = vpack.c.bf16 %v922_v43, %v921_v44  ;;  %v283_v50 = vpop.permute.xlu1 %282  ;;  %v25_v43 = vld [vmem:[%s4315_s1 + $0x50] sm:$0xff]  ;;  %v182_v44 = vld [vmem:[%s4313_s2 + $0x178] sm:$0xff] }
  0x92   :  { %v278_v51 = vpop.permute.xlu0 %277  ;;  %v860_v52 = vmul.f32 %v283_v50, %v20_v45  ;;  %462 = vperm.xlu1 %2926, %v176_v47   ;;  %v181_v45 = vld [vmem:[%s4313_s2 + $0x170] sm:$0xff] }
  0x93   :  { %v859_v53 = vmul.f32 %v278_v51, %v19_v46  ;;  %457 = vperm.xlu0 %2925, %v175_v48   ;;  %2227 = vmatpush1.bf16.msra.mxu0 %v1008_v49  ;;  %v90_v51 = vld [vmem:[%s4315_s1 + $0x258] sm:$0xff] }
  0x94   :  { %2228 = vmatprep.subr.bf16.mxu0 %v2927_v0 }
  0x95   :  { %v977_v58 = vpack.c.bf16 %v860_v52, %v859_v53  ;;  %v603_v59 = vpop.permute.xlu1 %602  ;;  %v89_v52 = vld [vmem:[%s4315_s1 + $0x250] sm:$0xff]  ;;  %v238_v53 = vld [vmem:[%s4313_s2 + $0x338] sm:$0xff] }
  0x96   :  { %v598_v60 = vpop.permute.xlu0 %597  ;;  %v924_v61 = vmul.f32 %v603_v59, %v84_v54  ;;  %742 = vperm.xlu1 %2926, %v232_v56   ;;  %v237_v54 = vld [vmem:[%s4313_s2 + $0x330] sm:$0xff] }
  0x97   :  { %v923_v62 = vmul.f32 %v598_v60, %v83_v55  ;;  %737 = vperm.xlu0 %2925, %v231_v57   ;;  %1891 = vmatpush1.bf16.msra.mxu1 %v977_v58  ;;  %v28_v60 = vld [vmem:[%s4315_s1 + $0x68] sm:$0xff] }
  0x98   :  { %1892 = vmatprep.subr.bf16.mxu1 %v2927_v0 }
  0x99   :  { %v1009_v6 = vpack.c.bf16 %v924_v61, %v923_v62  ;;  %v293_v8 = vpop.permute.xlu1 %292  ;;  %v27_v61 = vld [vmem:[%s4315_s1 + $0x60] sm:$0xff]  ;;  %v184_v62 = vld [vmem:[%s4313_s2 + $0x188] sm:$0xff] }
  0x9a   :  { %v288_v9 = vpop.permute.xlu0 %287  ;;  %v862_v10 = vmul.f32 %v293_v8, %v22_v63  ;;  %472 = vperm.xlu1 %2926, %v178_v4   ;;  %v183_v63 = vld [vmem:[%s4313_s2 + $0x180] sm:$0xff] }
  0x9b   :  { %v861_v11 = vmul.f32 %v288_v9, %v21_v1  ;;  %467 = vperm.xlu0 %2925, %v177_v5   ;;  %2229 = vmatpush1.bf16.msra.mxu0 %v1009_v6  ;;  %v92_v9 = vld [vmem:[%s4315_s1 + $0x268] sm:$0xff] }
  0x9c   :  { %2230 = vmatprep.subr.bf16.mxu0 %v2927_v0 }
  0x9d   :  { %v978_v18 = vpack.c.bf16 %v862_v10, %v861_v11  ;;  %v613_v20 = vpop.permute.xlu1 %612  ;;  %v91_v10 = vld [vmem:[%s4315_s1 + $0x260] sm:$0xff]  ;;  %v240_v11 = vld [vmem:[%s4313_s2 + $0x348] sm:$0xff] }
  0x9e   :  { %v608_v21 = vpop.permute.xlu0 %607  ;;  %v926_v22 = vmul.f32 %v613_v20, %v86_v12  ;;  %752 = vperm.xlu1 %2926, %v234_v16   ;;  %v239_v12 = vld [vmem:[%s4313_s2 + $0x340] sm:$0xff] }
  0x9f   :  { %v925_v23 = vmul.f32 %v608_v21, %v85_v15  ;;  %747 = vperm.xlu0 %2925, %v233_v17   ;;  %1893 = vmatpush1.bf16.msra.mxu1 %v978_v18  ;;  %v30_v21 = vld [vmem:[%s4315_s1 + $0x78] sm:$0xff] }
  0xa0   :  { %1894 = vmatprep.subr.bf16.mxu1 %v2927_v0 }
  0xa1   :  { %v1010_v28 = vpack.c.bf16 %v926_v22, %v925_v23  ;;  %v303_v29 = vpop.permute.xlu1 %302  ;;  %v29_v22 = vld [vmem:[%s4315_s1 + $0x70] sm:$0xff]  ;;  %v186_v23 = vld [vmem:[%s4313_s2 + $0x198] sm:$0xff] }
  0xa2   :  { %v298_v30 = vpop.permute.xlu0 %297  ;;  %v864_v31 = vmul.f32 %v303_v29, %v24_v24  ;;  %482 = vperm.xlu1 %2926, %v180_v26   ;;  %v185_v24 = vld [vmem:[%s4313_s2 + $0x190] sm:$0xff] }
  0xa3   :  { %v863_v32 = vmul.f32 %v298_v30, %v23_v25  ;;  %477 = vperm.xlu0 %2925, %v179_v27   ;;  %2231 = vmatpush1.bf16.msra.mxu0 %v1010_v28  ;;  %v94_v30 = vld [vmem:[%s4315_s1 + $0x278] sm:$0xff] }
  0xa4   :  { %2232 = vmatprep.subr.bf16.mxu0 %v2927_v0 }
  0xa5   :  { %v979_v37 = vpack.c.bf16 %v864_v31, %v863_v32  ;;  %v623_v38 = vpop.permute.xlu1 %622  ;;  %v93_v31 = vld [vmem:[%s4315_s1 + $0x270] sm:$0xff]  ;;  %v242_v32 = vld [vmem:[%s4313_s2 + $0x358] sm:$0xff] }
  0xa6   :  { %v618_v39 = vpop.permute.xlu0 %617  ;;  %v928_v40 = vmul.f32 %v623_v38, %v88_v33  ;;  %762 = vperm.xlu1 %2926, %v236_v35   ;;  %v241_v33 = vld [vmem:[%s4313_s2 + $0x350] sm:$0xff] }
  0xa7   :  { %v927_v41 = vmul.f32 %v618_v39, %v87_v34  ;;  %757 = vperm.xlu0 %2925, %v235_v36   ;;  %1895 = vmatpush1.bf16.msra.mxu1 %v979_v37  ;;  %v32_v39 = vld [vmem:[%s4315_s1 + $0x88] sm:$0xff] }
  0xa8   :  { %1896 = vmatprep.subr.bf16.mxu1 %v2927_v0 }
  0xa9   :  { %v1011_v46 = vpack.c.bf16 %v928_v40, %v927_v41  ;;  %v313_v47 = vpop.permute.xlu1 %312  ;;  %v31_v40 = vld [vmem:[%s4315_s1 + $0x80] sm:$0xff]  ;;  %v188_v41 = vld [vmem:[%s4313_s2 + $0x1a8] sm:$0xff] }
  0xaa   :  { %v308_v48 = vpop.permute.xlu0 %307  ;;  %v866_v49 = vmul.f32 %v313_v47, %v26_v42  ;;  %492 = vperm.xlu1 %2926, %v182_v44   ;;  %v187_v42 = vld [vmem:[%s4313_s2 + $0x1a0] sm:$0xff] }
  0xab   :  { %v865_v50 = vmul.f32 %v308_v48, %v25_v43  ;;  %487 = vperm.xlu0 %2925, %v181_v45   ;;  %2233 = vmatpush1.bf16.msra.mxu0 %v1011_v46  ;;  %v96_v48 = vld [vmem:[%s4315_s1 + $0x288] sm:$0xff] }
  0xac   :  { %2234 = vmatprep.subr.bf16.mxu0 %v2927_v0 }
  0xad   :  { %v980_v55 = vpack.c.bf16 %v866_v49, %v865_v50  ;;  %v633_v56 = vpop.permute.xlu1 %632  ;;  %v95_v49 = vld [vmem:[%s4315_s1 + $0x280] sm:$0xff]  ;;  %v244_v50 = vld [vmem:[%s4313_s2 + $0x368] sm:$0xff] }
  0xae   :  { %v628_v57 = vpop.permute.xlu0 %627  ;;  %v930_v58 = vmul.f32 %v633_v56, %v90_v51  ;;  %772 = vperm.xlu1 %2926, %v238_v53   ;;  %v243_v51 = vld [vmem:[%s4313_s2 + $0x360] sm:$0xff] }
  0xaf   :  { %v929_v59 = vmul.f32 %v628_v57, %v89_v52  ;;  %767 = vperm.xlu0 %2925, %v237_v54   ;;  %1897 = vmatpush1.bf16.msra.mxu1 %v980_v55  ;;  %v34_v57 = vld [vmem:[%s4315_s1 + $0x98] sm:$0xff] }
  0xb0   :  { %1898 = vmatprep.subr.bf16.mxu1 %v2927_v0 }
  0xb1   :  { %v1012_v1 = vpack.c.bf16 %v930_v58, %v929_v59  ;;  %v323_v4 = vpop.permute.xlu1 %322  ;;  %v33_v58 = vld [vmem:[%s4315_s1 + $0x90] sm:$0xff]  ;;  %v190_v59 = vld [vmem:[%s4313_s2 + $0x1b8] sm:$0xff] }
  0xb2   :  { %v318_v5 = vpop.permute.xlu0 %317  ;;  %v868_v6 = vmul.f32 %v323_v4, %v28_v60  ;;  %502 = vperm.xlu1 %2926, %v184_v62   ;;  %v189_v60 = vld [vmem:[%s4313_s2 + $0x1b0] sm:$0xff] }
  0xb3   :  { %v867_v8 = vmul.f32 %v318_v5, %v27_v61  ;;  %497 = vperm.xlu0 %2925, %v183_v63   ;;  %2235 = vmatpush1.bf16.msra.mxu0 %v1012_v1  ;;  %v98_v5 = vld [vmem:[%s4315_s1 + $0x298] sm:$0xff] }
  0xb4   :  { %2236 = vmatprep.subr.bf16.mxu0 %v2927_v0 }
  0xb5   :  { %v981_v15 = vpack.c.bf16 %v868_v6, %v867_v8  ;;  %v643_v16 = vpop.permute.xlu1 %642  ;;  %v97_v6 = vld [vmem:[%s4315_s1 + $0x290] sm:$0xff]  ;;  %v246_v8 = vld [vmem:[%s4313_s2 + $0x378] sm:$0xff] }
  0xb6   :  { %v638_v17 = vpop.permute.xlu0 %637  ;;  %v932_v18 = vmul.f32 %v643_v16, %v92_v9  ;;  %782 = vperm.xlu1 %2926, %v240_v11   ;;  %v245_v9 = vld [vmem:[%s4313_s2 + $0x370] sm:$0xff] }
  0xb7   :  { %v931_v20 = vmul.f32 %v638_v17, %v91_v10  ;;  %777 = vperm.xlu0 %2925, %v239_v12   ;;  %1899 = vmatpush1.bf16.msra.mxu1 %v981_v15  ;;  %v36_v17 = vld [vmem:[%s4315_s1 + $0xa8] sm:$0xff] }
  0xb8   :  { %1900 = vmatprep.subr.bf16.mxu1 %v2927_v0 }
  0xb9   :  { %v1013_v25 = vpack.c.bf16 %v932_v18, %v931_v20  ;;  %v333_v26 = vpop.permute.xlu1 %332  ;;  %v35_v18 = vld [vmem:[%s4315_s1 + $0xa0] sm:$0xff]  ;;  %v192_v20 = vld [vmem:[%s4313_s2 + $0x1c8] sm:$0xff] }
  0xba   :  { %v328_v27 = vpop.permute.xlu0 %327  ;;  %v870_v28 = vmul.f32 %v333_v26, %v30_v21  ;;  %512 = vperm.xlu1 %2926, %v186_v23   ;;  %v191_v21 = vld [vmem:[%s4313_s2 + $0x1c0] sm:$0xff] }
  0xbb   :  { %v869_v29 = vmul.f32 %v328_v27, %v29_v22  ;;  %507 = vperm.xlu0 %2925, %v185_v24   ;;  %2237 = vmatpush1.bf16.msra.mxu0 %v1013_v25  ;;  %v100_v27 = vld [vmem:[%s4315_s1 + $0x2a8] sm:$0xff] }
  0xbc   :  { %2238 = vmatprep.subr.bf16.mxu0 %v2927_v0 }
  0xbd   :  { %v982_v34 = vpack.c.bf16 %v870_v28, %v869_v29  ;;  %v653_v35 = vpop.permute.xlu1 %652  ;;  %v99_v28 = vld [vmem:[%s4315_s1 + $0x2a0] sm:$0xff]  ;;  %v248_v29 = vld [vmem:[%s4313_s2 + $0x388] sm:$0xff] }
  0xbe   :  { %v648_v36 = vpop.permute.xlu0 %647  ;;  %v934_v37 = vmul.f32 %v653_v35, %v94_v30  ;;  %792 = vperm.xlu1 %2926, %v242_v32   ;;  %v247_v30 = vld [vmem:[%s4313_s2 + $0x380] sm:$0xff] }
  0xbf   :  { %v933_v38 = vmul.f32 %v648_v36, %v93_v31  ;;  %787 = vperm.xlu0 %2925, %v241_v33   ;;  %1901 = vmatpush1.bf16.msra.mxu1 %v982_v34  ;;  %v38_v36 = vld [vmem:[%s4315_s1 + $0xb8] sm:$0xff] }
  0xc0   :  { %1902 = vmatprep.subr.bf16.mxu1 %v2927_v0 }
  0xc1   :  { %v1014_v43 = vpack.c.bf16 %v934_v37, %v933_v38  ;;  %v343_v44 = vpop.permute.xlu1 %342  ;;  %v37_v37 = vld [vmem:[%s4315_s1 + $0xb0] sm:$0xff]  ;;  %v194_v38 = vld [vmem:[%s4313_s2 + $0x1d8] sm:$0xff] }
  0xc2   :  { %v338_v45 = vpop.permute.xlu0 %337  ;;  %v872_v46 = vmul.f32 %v343_v44, %v32_v39  ;;  %522 = vperm.xlu1 %2926, %v188_v41   ;;  %v193_v39 = vld [vmem:[%s4313_s2 + $0x1d0] sm:$0xff] }
  0xc3   :  { %v871_v47 = vmul.f32 %v338_v45, %v31_v40  ;;  %517 = vperm.xlu0 %2925, %v187_v42   ;;  %2239 = vmatpush1.bf16.msra.mxu0 %v1014_v43  ;;  %v102_v45 = vld [vmem:[%s4315_s1 + $0x2b8] sm:$0xff] }
  0xc4   :  { %2240 = vmatprep.subr.bf16.mxu0 %v2927_v0 }
  0xc5   :  { %v983_v52 = vpack.c.bf16 %v872_v46, %v871_v47  ;;  %v663_v53 = vpop.permute.xlu1 %662  ;;  %v101_v46 = vld [vmem:[%s4315_s1 + $0x2b0] sm:$0xff]  ;;  %v250_v47 = vld [vmem:[%s4313_s2 + $0x398] sm:$0xff] }
  0xc6   :  { %v658_v54 = vpop.permute.xlu0 %657  ;;  %v936_v55 = vmul.f32 %v663_v53, %v96_v48  ;;  %802 = vperm.xlu1 %2926, %v244_v50   ;;  %v249_v48 = vld [vmem:[%s4313_s2 + $0x390] sm:$0xff] }
  0xc7   :  { %v935_v56 = vmul.f32 %v658_v54, %v95_v49  ;;  %797 = vperm.xlu0 %2925, %v243_v51   ;;  %1903 = vmatpush1.bf16.msra.mxu1 %v983_v52  ;;  %v40_v54 = vld [vmem:[%s4315_s1 + $0xc8] sm:$0xff] }
  0xc8   :  { %1904 = vmatprep.subr.bf16.mxu1 %v2927_v0 }
  0xc9   :  { %v1015_v61 = vpack.c.bf16 %v936_v55, %v935_v56  ;;  %v353_v62 = vpop.permute.xlu1 %352  ;;  %v39_v55 = vld [vmem:[%s4315_s1 + $0xc0] sm:$0xff]  ;;  %v196_v56 = vld [vmem:[%s4313_s2 + $0x1e8] sm:$0xff] }
  0xca   :  { %v348_v63 = vpop.permute.xlu0 %347  ;;  %v874_v1 = vmul.f32 %v353_v62, %v34_v57  ;;  %532 = vperm.xlu1 %2926, %v190_v59   ;;  %v195_v57 = vld [vmem:[%s4313_s2 + $0x1e0] sm:$0xff] }
  0xcb   :  { %v873_v4 = vmul.f32 %v348_v63, %v33_v58  ;;  %527 = vperm.xlu0 %2925, %v189_v60   ;;  %2241 = vmatpush1.bf16.msra.mxu0 %v1015_v61  ;;  %v104_v63 = vld [vmem:[%s4315_s1 + $0x2c8] sm:$0xff] }
  0xcc   :  { %2242 = vmatprep.subr.bf16.mxu0 %v2927_v0 }
  0xcd   :  { %v984_v10 = vpack.c.bf16 %v874_v1, %v873_v4  ;;  %v673_v11 = vpop.permute.xlu1 %672  ;;  %v103_v1 = vld [vmem:[%s4315_s1 + $0x2c0] sm:$0xff]  ;;  %v252_v4 = vld [vmem:[%s4313_s2 + $0x3a8] sm:$0xff] }
  0xce   :  { %v668_v12 = vpop.permute.xlu0 %667  ;;  %v938_v15 = vmul.f32 %v673_v11, %v98_v5  ;;  %812 = vperm.xlu1 %2926, %v246_v8   ;;  %v251_v5 = vld [vmem:[%s4313_s2 + $0x3a0] sm:$0xff] }
  0xcf   :  { %v937_v16 = vmul.f32 %v668_v12, %v97_v6  ;;  %807 = vperm.xlu0 %2925, %v245_v9   ;;  %1905 = vmatpush1.bf16.msra.mxu1 %v984_v10  ;;  %v42_v12 = vld [vmem:[%s4315_s1 + $0xd8] sm:$0xff] }
  0xd0   :  { %1906 = vmatprep.subr.bf16.mxu1 %v2927_v0 }
  0xd1   :  { %v1016_v22 = vpack.c.bf16 %v938_v15, %v937_v16  ;;  %v363_v23 = vpop.permute.xlu1 %362  ;;  %v41_v15 = vld [vmem:[%s4315_s1 + $0xd0] sm:$0xff]  ;;  %v198_v16 = vld [vmem:[%s4313_s2 + $0x1f8] sm:$0xff] }
  0xd2   :  { %v358_v24 = vpop.permute.xlu0 %357  ;;  %v876_v25 = vmul.f32 %v363_v23, %v36_v17  ;;  %542 = vperm.xlu1 %2926, %v192_v20   ;;  %v197_v17 = vld [vmem:[%s4313_s2 + $0x1f0] sm:$0xff] }
  0xd3   :  { %v875_v26 = vmul.f32 %v358_v24, %v35_v18  ;;  %537 = vperm.xlu0 %2925, %v191_v21   ;;  %2243 = vmatpush1.bf16.msra.mxu0 %v1016_v22  ;;  %v106_v24 = vld [vmem:[%s4315_s1 + $0x2d8] sm:$0xff] }
  0xd4   :  { %2244 = vmatprep.subr.bf16.mxu0 %v2927_v0 }
  0xd5   :  { %v985_v31 = vpack.c.bf16 %v876_v25, %v875_v26  ;;  %v683_v32 = vpop.permute.xlu1 %682  ;;  %v105_v25 = vld [vmem:[%s4315_s1 + $0x2d0] sm:$0xff]  ;;  %v254_v26 = vld [vmem:[%s4313_s2 + $0x3b8] sm:$0xff] }
  0xd6   :  { %v678_v33 = vpop.permute.xlu0 %677  ;;  %v940_v34 = vmul.f32 %v683_v32, %v100_v27  ;;  %822 = vperm.xlu1 %2926, %v248_v29   ;;  %v253_v27 = vld [vmem:[%s4313_s2 + $0x3b0] sm:$0xff] }
  0xd7   :  { %v939_v35 = vmul.f32 %v678_v33, %v99_v28  ;;  %817 = vperm.xlu0 %2925, %v247_v30   ;;  %1907 = vmatpush1.bf16.msra.mxu1 %v985_v31  ;;  %v44_v33 = vld [vmem:[%s4315_s1 + $0xe8] sm:$0xff] }
  0xd8   :  { %1908 = vmatprep.subr.bf16.mxu1 %v2927_v0 }
  0xd9   :  { %v1017_v40 = vpack.c.bf16 %v940_v34, %v939_v35  ;;  %v373_v41 = vpop.permute.xlu1 %372  ;;  %v43_v34 = vld [vmem:[%s4315_s1 + $0xe0] sm:$0xff] }
  0xda   :  { %v368_v42 = vpop.permute.xlu0 %367  ;;  %v878_v43 = vmul.f32 %v373_v41, %v38_v36  ;;  %552 = vperm.xlu1 %2926, %v194_v38   ;;  %v107_v41 = vld [vmem:[%s4315_s1 + $0x2e0] sm:$0xff] }
  0xdb   :  { %v877_v44 = vmul.f32 %v368_v42, %v37_v37  ;;  %547 = vperm.xlu0 %2925, %v193_v39   ;;  %2245 = vmatpush1.bf16.msra.mxu0 %v1017_v40  ;;  %v108_v40 = vld [vmem:[%s4315_s1 + $0x2e8] sm:$0xff] }
  0xdc   :  { %2246 = vmatprep.subr.bf16.mxu0 %v2927_v0 }
  0xdd   :  { %v986_v49 = vpack.c.bf16 %v878_v43, %v877_v44  ;;  %v693_v50 = vpop.permute.xlu1 %692 }
  0xde   :  { %v688_v51 = vpop.permute.xlu0 %687  ;;  %v942_v52 = vmul.f32 %v693_v50, %v102_v45  ;;  %832 = vperm.xlu1 %2926, %v250_v47   ;;  %v46_v47 = vld [vmem:[%s4315_s1 + $0xf8] sm:$0xff] }
  0xdf   :  { %v941_v53 = vmul.f32 %v688_v51, %v101_v46  ;;  %827 = vperm.xlu0 %2925, %v249_v48   ;;  %1909 = vmatpush1.bf16.msra.mxu1 %v986_v49  ;;  %v45_v48 = vld [vmem:[%s4315_s1 + $0xf0] sm:$0xff] }
  0xe0   :  { %1910 = vmatprep.subr.bf16.mxu1 %v2927_v0 }
  0xe1   :  { %v1018_v58 = vpack.c.bf16 %v942_v52, %v941_v53  ;;  %v383_v59 = vpop.permute.xlu1 %382 }
  0xe2   :  { %v378_v60 = vpop.permute.xlu0 %377  ;;  %v880_v61 = vmul.f32 %v383_v59, %v40_v54  ;;  %562 = vperm.xlu1 %2926, %v196_v56   ;;  %v110_v54 = vld [vmem:[%s4315_s1 + $0x2f8] sm:$0xff]  ;;  %v1043_v56 = vld [vmem:[%s4314_s0 + $0x40] sm:$0xff] }
  0xe3   :  { %v879_v62 = vmul.f32 %v378_v60, %v39_v55  ;;  %557 = vperm.xlu0 %2925, %v195_v57   ;;  %2247 = vmatpush1.bf16.msra.mxu0 %v1018_v58  ;;  %v109_v55 = vld [vmem:[%s4315_s1 + $0x2f0] sm:$0xff]  ;;  %v1047_v57 = vld [vmem:[%s4314_s0 + $0x60] sm:$0xff] }
  0xe4   :  { %2248 = vmatprep.subr.bf16.mxu0 %v2927_v0 }
  0xe5   :  { %v987_v6 = vpack.c.bf16 %v880_v61, %v879_v62  ;;  %v703_v8 = vpop.permute.xlu1 %702 }
  0xe6   :  { %v698_v9 = vpop.permute.xlu0 %697  ;;  %v944_v10 = vmul.f32 %v703_v8, %v104_v63  ;;  %842 = vperm.xlu1 %2926, %v252_v4   ;;  %v48_v63 = vld [vmem:[%s4315_s1 + $0x108] sm:$0xff]  ;;  %v47_v4 = vld [vmem:[%s4315_s1 + $0x100] sm:$0xff] }
  0xe7   :  { %v943_v11 = vmul.f32 %v698_v9, %v103_v1  ;;  %837 = vperm.xlu0 %2925, %v251_v5   ;;  %1911 = vmatpush1.bf16.msra.mxu1 %v987_v6  ;;  %v2610_v1 = vcombine.high %v1043_v56, %v1047_v57  ;;  %v1045_v5 = vld [vmem:[%s4314_s0 + $0x50] sm:$0xff] }
  0xe8   :  { %1912 = vmatprep.subr.bf16.mxu1 %v2927_v0  ;;  %v1049_v6 = vld [vmem:[%s4314_s0 + $0x70] sm:$0xff] }
  0xe9   :  { %v1019_v18 = vpack.c.bf16 %v944_v10, %v943_v11  ;;  %v393_v20 = vpop.permute.xlu1 %392 }
  0xea   :  { %v388_v21 = vpop.permute.xlu0 %387  ;;  %v882_v22 = vmul.f32 %v393_v20, %v42_v12  ;;  %572 = vperm.xlu1 %2926, %v198_v16   ;;  %v2614_v16 = vcombine.high %v1045_v5, %v1049_v6 }
  0xeb   :  { %v881_v23 = vmul.f32 %v388_v21, %v41_v15  ;;  %567 = vperm.xlu0 %2925, %v197_v17   ;;  %2249 = vmatpush1.bf16.msra.mxu0 %v1019_v18  ;;  %v50_v15 = vld [vmem:[%s4315_s1 + $0x118] sm:$0xff]  ;;  %v49_v17 = vld [vmem:[%s4315_s1 + $0x110] sm:$0xff]  ;;  %v1051_v18 = vld [vmem:[%s4314_s0 + $0x80] sm:$0xff]  ;;  %v2609_v21 = vcombine.low %v1043_v56, %v1047_v57 }
  0xec   :  { %2250 = vmatprep.subr.bf16.mxu0 %v2927_v0  ;;  %v111_v56 = vld [vmem:[%s4315_s1 + $0x300] sm:$0xff] }
  0xed   :  { %v988_v28 = vpack.c.bf16 %v882_v22, %v881_v23  ;;  %v713_v29 = vpop.permute.xlu1 %712  ;;  %v1067_v57 = vld [vmem:[%s4314_s0 + $0x100] sm:$0xff] }
  0xee   :  { %v708_v30 = vpop.permute.xlu0 %707  ;;  %v946_v31 = vmul.f32 %v713_v29, %v106_v24  ;;  %852 = vperm.xlu1 %2926, %v254_v26   ;;  %v52_v24 = vld [vmem:[%s4315_s1 + $0x128] sm:$0xff]  ;;  %v51_v26 = vld [vmem:[%s4315_s1 + $0x120] sm:$0xff]  ;;  %v2613_v29 = vcombine.low %v1045_v5, %v1049_v6  ;;  %v57_v6 = vld [vmem:[%s4315_s1 + $0x150] sm:$0xff] }
  0xef   :  { %v945_v32 = vmul.f32 %v708_v30, %v105_v25  ;;  %847 = vperm.xlu0 %2925, %v253_v27   ;;  %1913 = vmatpush1.bf16.msra.mxu1 %v988_v28  ;;  %v2618_v25 = vcombine.high %v1051_v18, %v1055_v2 }
  0xf0   :  { %1914 = vmatprep.subr.bf16.mxu1 %v2927_v0 }
  0xf1   :  { %v1020_v35 = vpack.c.bf16 %v946_v31, %v945_v32  ;;  %v403_v36 = vpop.permute.xlu1 %402  ;;  %v54_v32 = vld [vmem:[%s4315_s1 + $0x138] sm:$0xff] }
  0xf2   :  { %v398_v37 = vpop.permute.xlu0 %397  ;;  %v884_v38 = vmul.f32 %v403_v36, %v44_v33  ;;  %v2622_v33 = vcombine.high %v1053_v13, %v1057_v14  ;;  %v1063_v36 = vld [vmem:[%s4314_s0 + $0xe0] sm:$0xff] }
  0xf3   :  { %v883_v39 = vmul.f32 %v398_v37, %v43_v34  ;;  %2251 = vmatpush1.bf16.msra.mxu0 %v1020_v35  ;;  %v53_v34 = vld [vmem:[%s4315_s1 + $0x130] sm:$0xff]  ;;  %v1059_v35 = vld [vmem:[%s4314_s0 + $0xc0] sm:$0xff] }
  0xf4   :  { %2252 = vmatprep.subr.bf16.mxu0 %v2927_v0 }
  0xf5   :  { %v989_v42 = vpack.c.bf16 %v884_v38, %v883_v39  ;;  %v723_v43 = vpop.permute.xlu1 %722 }
  0xf6   :  { %v718_v44 = vpop.permute.xlu0 %717  ;;  %v948_v45 = vmul.f32 %v723_v43, %v108_v40  ;;  %v2617_v40 = vcombine.low %v1051_v18, %v1055_v2  ;;  %v56_v43 = vld [vmem:[%s4315_s1 + $0x148] sm:$0xff]  ;;  %v114_v18 = vld [vmem:[%s4315_s1 + $0x318] sm:$0xff] }
  0xf7   :  { %v947_v46 = vmul.f32 %v718_v44, %v107_v41  ;;  %1915 = vmatpush1.bf16.msra.mxu1 %v989_v42  ;;  %v2626_v44 = vcombine.high %v1059_v35, %v1063_v36 }
  0xf8   :  { %1916 = vmatprep.subr.bf16.mxu1 %v2927_v0 }
  0xf9   :  { %v1021_v49 = vpack.c.bf16 %v948_v45, %v947_v46  ;;  %v413_v50 = vpop.permute.xlu1 %412  ;;  %v55_v45 = vld [vmem:[%s4315_s1 + $0x140] sm:$0xff]  ;;  %v1061_v46 = vld [vmem:[%s4314_s0 + $0xd0] sm:$0xff] }
  0xfa   :  { %v408_v51 = vpop.permute.xlu0 %407  ;;  %v886_v52 = vmul.f32 %v413_v50, %v46_v47  ;;  %v1065_v47 = vld [vmem:[%s4314_s0 + $0xf0] sm:$0xff] }
  0xfb   :  { %v885_v53 = vmul.f32 %v408_v51, %v45_v48  ;;  %2253 = vmatpush1.bf16.msra.mxu0 %v1021_v49  ;;  %v2621_v51 = vcombine.low %v1053_v13, %v1057_v14  ;;  %v60_v13 = vld [vmem:[%s4315_s1 + $0x168] sm:$0xff] }
  0xfc   :  { %2254 = vmatprep.subr.bf16.mxu0 %v2927_v0 }
  0xfd   :  { %v990_v58 = vpack.c.bf16 %v886_v52, %v885_v53  ;;  %v733_v59 = vpop.permute.xlu1 %732 }
  0xfe   :  { %v728_v60 = vpop.permute.xlu0 %727  ;;  %v950_v61 = vmul.f32 %v733_v59, %v110_v54  ;;  %v112_v54 = vld [vmem:[%s4315_s1 + $0x308] sm:$0xff] }
  0xff   :  { %v949_v62 = vmul.f32 %v728_v60, %v109_v55  ;;  %1917 = vmatpush1.bf16.msra.mxu1 %v990_v58  ;;  %v2630_v55 = vcombine.high %v1061_v46, %v1065_v47  ;;  %v1071_v58 = vld [vmem:[%s4314_s0 + $0x120] sm:$0xff] }
 0x100   :  { %2055 = vmatprep.subr.bf16.mxu1 %v2927_v0  ;;  %v2634_v5 = vcombine.high %v1067_v57, %v1071_v58 }
 0x101   :  { %v1022_v8 = vpack.c.bf16 %v950_v61, %v949_v62  ;;  %v423_v9 = vpop.permute.xlu1 %422  ;;  %v2625_v62 = vcombine.low %v1059_v35, %v1063_v36  ;;  %v116_v35 = vld [vmem:[%s4315_s1 + $0x328] sm:$0xff] }
 0x102   :  { %v418_v10 = vpop.permute.xlu0 %417  ;;  %1919 = vmatmul.mubr.bf16.vlgmr.msra.gmra.mrb[0].mxu1 %v2601_v7  ;;  %v888_v11 = vmul.f32 %v423_v9, %v48_v63  ;;  %v1073_v9 = vld [vmem:[%s4314_s0 + $0x130] sm:$0xff] }
 0x103   :  { %v887_v12 = vmul.f32 %v418_v10, %v47_v4  ;;  %2255 = vmatpush1.bf16.msra.mxu0 %v1022_v8  ;;  %1926 = vmatprep.mubr.bf16.mxu1 %v2610_v1  ;;  %v58_v4 = vld [vmem:[%s4315_s1 + $0x158] sm:$0xff]  ;;  %v1069_v8 = vld [vmem:[%s4314_s0 + $0x110] sm:$0xff] }
 0x104   :  { %2393 = vmatprep.subr.bf16.mxu0 %v2927_v0  ;;  %v2638_v2 = vcombine.high %v1069_v8, %v1073_v9 }
 0x105   :  { %v991_v3 = vpack.c.bf16 %v888_v11, %v887_v12  ;;  %v433_v7 = vpop.permute.xlu1 %432 }
 0x106   :  { %v428_v20 = vpop.permute.xlu0 %427  ;;  %2257 = vmatmul.mubr.bf16.vlgmr.msra.gmra.mrb[0].mxu0 %v2605_v19  ;;  %v890_v22 = vmul.f32 %v433_v7, %v50_v15  ;;  %v2629_v15 = vcombine.low %v1061_v46, %v1065_v47  ;;  %v1075_v7 = vld [vmem:[%s4314_s0 + $0x140] sm:$0xff]  ;;  %v62_v46 = vld [vmem:[%s4315_s1 + $0x178] sm:$0xff] }
 0x107   :  { %v889_v23 = vmul.f32 %v428_v20, %v49_v17  ;;  %2056 = vmatpush1.bf16.msra.mxu1 %v991_v3  ;;  %2264 = vmatprep.mubr.bf16.mxu0 %v2614_v16  ;;  %v113_v3 = vld [vmem:[%s4315_s1 + $0x310] sm:$0xff]  ;;  %v1079_v20 = vld [vmem:[%s4314_s0 + $0x160] sm:$0xff] }
 0x108   :  { %2057 = vmatprep.subr.bf16.mxu1 %v2927_v0  ;;  %v2642_v14 = vcombine.high %v1075_v7, %v1079_v20 }
 0x109   :  { %v992_v19 = vpack.c.bf16 %v890_v22, %v889_v23  ;;  %v443_v27 = vpop.permute.xlu1 %442 }
 0x10a   :  { %v438_v28 = vpop.permute.xlu0 %437  ;;  %1927 = vmatmul.mubr.bf16.gmra.mrb[4].mxu1 %v2609_v21  ;;  %v892_v30 = vmul.f32 %v443_v27, %v52_v24  ;;  %v2633_v24 = vcombine.low %v1067_v57, %v1071_v58  ;;  %v1077_v27 = vld [vmem:[%s4314_s0 + $0x150] sm:$0xff]  ;;  %v118_v57 = vld [vmem:[%s4315_s1 + $0x338] sm:$0xff] }
 0x10b   :  { %v891_v31 = vmul.f32 %v438_v28, %v51_v26  ;;  %2058 = vmatpush1.bf16.msra.mxu1 %v992_v19  ;;  %1934 = vmatprep.mubr.bf16.mxu1 %v2618_v25  ;;  %v59_v19 = vld [vmem:[%s4315_s1 + $0x160] sm:$0xff]  ;;  %v1081_v28 = vld [vmem:[%s4314_s0 + $0x170] sm:$0xff] }
 0x10c   :  { %2059 = vmatprep.subr.bf16.mxu1 %v2927_v0  ;;  %v2646_v36 = vcombine.high %v1077_v27, %v1081_v28 }
 0x10d   :  { %v993_v37 = vpack.c.bf16 %v892_v30, %v891_v31  ;;  %v453_v38 = vpop.permute.xlu1 %452 }
 0x10e   :  { %v448_v39 = vpop.permute.xlu0 %447  ;;  %2265 = vmatmul.mubr.bf16.gmra.mrb[4].mxu0 %v2613_v29  ;;  %v894_v41 = vmul.f32 %v453_v38, %v54_v32  ;;  %v2637_v32 = vcombine.low %v1069_v8, %v1073_v9  ;;  %v1083_v38 = vld [vmem:[%s4314_s0 + $0x180] sm:$0xff]  ;;  %v64_v8 = vld [vmem:[%s4315_s1 + $0x188] sm:$0xff] }
 0x10f   :  { %v893_v42 = vmul.f32 %v448_v39, %v53_v34  ;;  %2060 = vmatpush1.bf16.msra.mxu1 %v993_v37  ;;  %2272 = vmatprep.mubr.bf16.mxu0 %v2622_v33  ;;  %v115_v37 = vld [vmem:[%s4315_s1 + $0x320] sm:$0xff] }
 0x110   :  { %2061 = vmatprep.subr.bf16.mxu1 %v2927_v0  ;;  %v1087_v39 = vld [vmem:[%s4314_s0 + $0x1a0] sm:$0xff] }
 0x111   :  { %v994_v48 = vpack.c.bf16 %v894_v41, %v893_v42  ;;  %v463_v49 = vpop.permute.xlu1 %462  ;;  %v2650_v47 = vcombine.high %v1083_v38, %v1087_v39 }
 0x112   :  { %v458_v50 = vpop.permute.xlu0 %457  ;;  %1935 = vmatmul.mubr.bf16.gmra.mrb[8].mxu1 %v2617_v40  ;;  %v896_v52 = vmul.f32 %v463_v49, %v56_v43  ;;  %v2641_v43 = vcombine.low %v1075_v7, %v1079_v20  ;;  %v1085_v49 = vld [vmem:[%s4314_s0 + $0x190] sm:$0xff]  ;;  %v120_v7 = vld [vmem:[%s4315_s1 + $0x348] sm:$0xff] }
 0x113   :  { %v895_v53 = vmul.f32 %v458_v50, %v55_v45  ;;  %2062 = vmatpush1.bf16.msra.mxu1 %v994_v48  ;;  %1942 = vmatprep.mubr.bf16.mxu1 %v2626_v44  ;;  %v61_v48 = vld [vmem:[%s4315_s1 + $0x170] sm:$0xff] }
 0x114   :  { %2063 = vmatprep.subr.bf16.mxu1 %v2927_v0  ;;  %v1089_v50 = vld [vmem:[%s4314_s0 + $0x1b0] sm:$0xff] }
 0x115   :  { %v995_v59 = vpack.c.bf16 %v896_v52, %v895_v53  ;;  %v743_v60 = vpop.permute.xlu1 %742  ;;  %v2654_v58 = vcombine.high %v1085_v49, %v1089_v50 }
 0x116   :  { %v738_v61 = vpop.permute.xlu0 %737  ;;  %2273 = vmatmul.mubr.bf16.gmra.mrb[8].mxu0 %v2621_v51  ;;  %v952_v63 = vmul.f32 %v743_v60, %v112_v54  ;;  %v2645_v54 = vcombine.low %v1077_v27, %v1081_v28  ;;  %v1091_v60 = vld [vmem:[%s4314_s0 + $0x1c0] sm:$0xff]  ;;  %v66_v27 = vld [vmem:[%s4315_s1 + $0x198] sm:$0xff] }
 0x117   :  { %v951_v1 = vmul.f32 %v738_v61, %v111_v56  ;;  %2064 = vmatpush1.bf16.msra.mxu1 %v995_v59  ;;  %2280 = vmatprep.mubr.bf16.mxu0 %v2630_v55  ;;  %v117_v59 = vld [vmem:[%s4315_s1 + $0x330] sm:$0xff]  ;;  %v1095_v61 = vld [vmem:[%s4314_s0 + $0x1e0] sm:$0xff] }
 0x118   :  { %2065 = vmatprep.subr.bf16.mxu1 %v2927_v0  ;;  %v2658_v9 = vcombine.high %v1091_v60, %v1095_v61 }
 0x119   :  { %v1023_v10 = vpack.c.bf16 %v952_v63, %v951_v1  ;;  %v473_v11 = vpop.permute.xlu1 %472 }
 0x11a   :  { %v468_v12 = vpop.permute.xlu0 %467  ;;  %1943 = vmatmul.mubr.bf16.gmra.mrb[12].mxu1 %v2625_v62  ;;  %v898_v16 = vmul.f32 %v473_v11, %v58_v4  ;;  %v2649_v4 = vcombine.low %v1083_v38, %v1087_v39  ;;  %v1093_v11 = vld [vmem:[%s4314_s0 + $0x1d0] sm:$0xff]  ;;  %v122_v38 = vld [vmem:[%s4315_s1 + $0x358] sm:$0xff] }
 0x11b   :  { %v897_v17 = vmul.f32 %v468_v12, %v57_v6  ;;  %2394 = vmatpush1.bf16.msra.mxu0 %v1023_v10  ;;  %1950 = vmatprep.mubr.bf16.mxu1 %v2634_v5  ;;  %v63_v10 = vld [vmem:[%s4315_s1 + $0x180] sm:$0xff]  ;;  %v1097_v12 = vld [vmem:[%s4314_s0 + $0x1f0] sm:$0xff] }
 0x11c   :  { %2395 = vmatprep.subr.bf16.mxu0 %v2927_v0  ;;  %v2662_v20 = vcombine.high %v1093_v11, %v1097_v12 }
 0x11d   :  { %v996_v21 = vpack.c.bf16 %v898_v16, %v897_v17  ;;  %v753_v22 = vpop.permute.xlu1 %752 }
 0x11e   :  { %v748_v23 = vpop.permute.xlu0 %747  ;;  %2281 = vmatmul.mubr.bf16.gmra.mrb[12].mxu0 %v2629_v15  ;;  %v954_v25 = vmul.f32 %v753_v22, %v114_v18  ;;  %v2653_v18 = vcombine.low %v1085_v49, %v1089_v50  ;;  %v1099_v22 = vld [vmem:[%s4314_s0 + $0x200] sm:$0xff]  ;;  %v68_v49 = vld [vmem:[%s4315_s1 + $0x1a8] sm:$0xff] }
 0x11f   :  { %v953_v26 = vmul.f32 %v748_v23, %v113_v3  ;;  %2066 = vmatpush1.bf16.msra.mxu1 %v996_v21  ;;  %2288 = vmatprep.mubr.bf16.mxu0 %v2638_v2  ;;  %v119_v21 = vld [vmem:[%s4315_s1 + $0x340] sm:$0xff] }
 0x120   :  { %2067 = vmatprep.subr.bf16.mxu1 %v2927_v0  ;;  %v1103_v23 = vld [vmem:[%s4314_s0 + $0x220] sm:$0xff] }
 0x121   :  { %v1024_v29 = vpack.c.bf16 %v954_v25, %v953_v26  ;;  %v483_v30 = vpop.permute.xlu1 %482  ;;  %v2666_v28 = vcombine.high %v1099_v22, %v1103_v23 }
 0x122   :  { %v478_v31 = vpop.permute.xlu0 %477  ;;  %1951 = vmatmul.mubr.bf16.gmra.mrb[16].mxu1 %v2633_v24  ;;  %v900_v33 = vmul.f32 %v483_v30, %v60_v13  ;;  %v2657_v13 = vcombine.low %v1091_v60, %v1095_v61  ;;  %v1101_v30 = vld [vmem:[%s4314_s0 + $0x210] sm:$0xff]  ;;  %v124_v60 = vld [vmem:[%s4315_s1 + $0x368] sm:$0xff] }
 0x123   :  { %v899_v34 = vmul.f32 %v478_v31, %v59_v19  ;;  %2396 = vmatpush1.bf16.msra.mxu0 %v1024_v29  ;;  %1958 = vmatprep.mubr.bf16.mxu1 %v2642_v14  ;;  %v65_v29 = vld [vmem:[%s4315_s1 + $0x190] sm:$0xff] }
 0x124   :  { %2397 = vmatprep.subr.bf16.mxu0 %v2927_v0  ;;  %v1105_v31 = vld [vmem:[%s4314_s0 + $0x230] sm:$0xff] }
 0x125   :  { %v997_v40 = vpack.c.bf16 %v900_v33, %v899_v34  ;;  %v763_v41 = vpop.permute.xlu1 %762  ;;  %v2670_v39 = vcombine.high %v1101_v30, %v1105_v31 }
 0x126   :  { %v758_v42 = vpop.permute.xlu0 %757  ;;  %2289 = vmatmul.mubr.bf16.gmra.mrb[16].mxu0 %v2637_v32  ;;  %v956_v44 = vmul.f32 %v763_v41, %v116_v35  ;;  %v2661_v35 = vcombine.low %v1093_v11, %v1097_v12  ;;  %v1107_v41 = vld [vmem:[%s4314_s0 + $0x240] sm:$0xff]  ;;  %v70_v11 = vld [vmem:[%s4315_s1 + $0x1b8] sm:$0xff] }
 0x127   :  { %v955_v45 = vmul.f32 %v758_v42, %v115_v37  ;;  %2068 = vmatpush1.bf16.msra.mxu1 %v997_v40  ;;  %2296 = vmatprep.mubr.bf16.mxu0 %v2646_v36  ;;  %v121_v40 = vld [vmem:[%s4315_s1 + $0x350] sm:$0xff]  ;;  %v1111_v42 = vld [vmem:[%s4314_s0 + $0x260] sm:$0xff] }
 0x128   :  { %2069 = vmatprep.subr.bf16.mxu1 %v2927_v0  ;;  %v2674_v50 = vcombine.high %v1107_v41, %v1111_v42 }
 0x129   :  { %v1025_v51 = vpack.c.bf16 %v956_v44, %v955_v45  ;;  %v493_v52 = vpop.permute.xlu1 %492 }
 0x12a   :  { %v488_v53 = vpop.permute.xlu0 %487  ;;  %1959 = vmatmul.mubr.bf16.gmra.mrb[20].mxu1 %v2641_v43  ;;  %v902_v55 = vmul.f32 %v493_v52, %v62_v46  ;;  %v2665_v46 = vcombine.low %v1099_v22, %v1103_v23  ;;  %v1109_v52 = vld [vmem:[%s4314_s0 + $0x250] sm:$0xff]  ;;  %v126_v22 = vld [vmem:[%s4315_s1 + $0x378] sm:$0xff] }
 0x12b   :  { %v901_v56 = vmul.f32 %v488_v53, %v61_v48  ;;  %2398 = vmatpush1.bf16.msra.mxu0 %v1025_v51  ;;  %1966 = vmatprep.mubr.bf16.mxu1 %v2650_v47  ;;  %v67_v51 = vld [vmem:[%s4315_s1 + $0x1a0] sm:$0xff]  ;;  %v1113_v53 = vld [vmem:[%s4314_s0 + $0x270] sm:$0xff] }
 0x12c   :  { %2399 = vmatprep.subr.bf16.mxu0 %v2927_v0  ;;  %v2678_v61 = vcombine.high %v1109_v52, %v1113_v53 }
 0x12d   :  { %v998_v62 = vpack.c.bf16 %v902_v55, %v901_v56  ;;  %v773_v63 = vpop.permute.xlu1 %772 }
 0x12e   :  { %v768_v1 = vpop.permute.xlu0 %767  ;;  %2297 = vmatmul.mubr.bf16.gmra.mrb[20].mxu0 %v2645_v54  ;;  %v958_v5 = vmul.f32 %v773_v63, %v118_v57  ;;  %v2669_v57 = vcombine.low %v1101_v30, %v1105_v31  ;;  %v1115_v63 = vld [vmem:[%s4314_s0 + $0x280] sm:$0xff]  ;;  %v72_v30 = vld [vmem:[%s4315_s1 + $0x1c8] sm:$0xff] }
 0x12f   :  { %v957_v6 = vmul.f32 %v768_v1, %v117_v59  ;;  %2070 = vmatpush1.bf16.msra.mxu1 %v998_v62  ;;  %2304 = vmatprep.mubr.bf16.mxu0 %v2654_v58  ;;  %v123_v62 = vld [vmem:[%s4315_s1 + $0x360] sm:$0xff] }
 0x130   :  { %2071 = vmatprep.subr.bf16.mxu1 %v2927_v0  ;;  %v1119_v1 = vld [vmem:[%s4314_s0 + $0x2a0] sm:$0xff] }
 0x131   :  { %v1026_v15 = vpack.c.bf16 %v958_v5, %v957_v6  ;;  %v503_v16 = vpop.permute.xlu1 %502  ;;  %v2682_v12 = vcombine.high %v1115_v63, %v1119_v1 }
 0x132   :  { %v498_v17 = vpop.permute.xlu0 %497  ;;  %1967 = vmatmul.mubr.bf16.gmra.mrb[24].mxu1 %v2649_v4  ;;  %v904_v2 = vmul.f32 %v503_v16, %v64_v8  ;;  %v2673_v8 = vcombine.low %v1107_v41, %v1111_v42  ;;  %v1117_v16 = vld [vmem:[%s4314_s0 + $0x290] sm:$0xff]  ;;  %v128_v41 = vld [vmem:[%s4315_s1 + $0x388] sm:$0xff] }
 0x133   :  { %v903_v3 = vmul.f32 %v498_v17, %v63_v10  ;;  %2400 = vmatpush1.bf16.msra.mxu0 %v1026_v15  ;;  %1974 = vmatprep.mubr.bf16.mxu1 %v2658_v9  ;;  %v69_v15 = vld [vmem:[%s4315_s1 + $0x1b0] sm:$0xff] }
 0x134   :  { %2401 = vmatprep.subr.bf16.mxu0 %v2927_v0  ;;  %v1121_v17 = vld [vmem:[%s4314_s0 + $0x2b0] sm:$0xff] }
 0x135   :  { %v999_v24 = vpack.c.bf16 %v904_v2, %v903_v3  ;;  %v783_v25 = vpop.permute.xlu1 %782  ;;  %v2686_v23 = vcombine.high %v1117_v16, %v1121_v17 }
 0x136   :  { %v778_v26 = vpop.permute.xlu0 %777  ;;  %2305 = vmatmul.mubr.bf16.gmra.mrb[24].mxu0 %v2653_v18  ;;  %v960_v14 = vmul.f32 %v783_v25, %v120_v7  ;;  %v2677_v7 = vcombine.low %v1109_v52, %v1113_v53  ;;  %v1123_v25 = vld [vmem:[%s4314_s0 + $0x2c0] sm:$0xff]  ;;  %v74_v52 = vld [vmem:[%s4315_s1 + $0x1d8] sm:$0xff] }
 0x137   :  { %v959_v19 = vmul.f32 %v778_v26, %v119_v21  ;;  %2072 = vmatpush1.bf16.msra.mxu1 %v999_v24  ;;  %2312 = vmatprep.mubr.bf16.mxu0 %v2662_v20  ;;  %v125_v24 = vld [vmem:[%s4315_s1 + $0x370] sm:$0xff]  ;;  %v1127_v26 = vld [vmem:[%s4314_s0 + $0x2e0] sm:$0xff] }
 0x138   :  { %2073 = vmatprep.subr.bf16.mxu1 %v2927_v0  ;;  %v2690_v31 = vcombine.high %v1123_v25, %v1127_v26 }
 0x139   :  { %v1027_v32 = vpack.c.bf16 %v960_v14, %v959_v19  ;;  %v513_v33 = vpop.permute.xlu1 %512 }
 0x13a   :  { %v508_v34 = vpop.permute.xlu0 %507  ;;  %1975 = vmatmul.mubr.bf16.gmra.mrb[28].mxu1 %v2657_v13  ;;  %v906_v36 = vmul.f32 %v513_v33, %v66_v27  ;;  %v2681_v27 = vcombine.low %v1115_v63, %v1119_v1  ;;  %v1125_v33 = vld [vmem:[%s4314_s0 + $0x2d0] sm:$0xff]  ;;  %v130_v63 = vld [vmem:[%s4315_s1 + $0x398] sm:$0xff] }
 0x13b   :  { %v905_v37 = vmul.f32 %v508_v34, %v65_v29  ;;  %2402 = vmatpush1.bf16.msra.mxu0 %v1027_v32  ;;  %1982 = vmatprep.mubr.bf16.mxu1 %v2666_v28  ;;  %v71_v32 = vld [vmem:[%s4315_s1 + $0x1c0] sm:$0xff]  ;;  %v1129_v34 = vld [vmem:[%s4314_s0 + $0x2f0] sm:$0xff] }
 0x13c   :  { %2403 = vmatprep.subr.bf16.mxu0 %v2927_v0  ;;  %v2694_v42 = vcombine.high %v1125_v33, %v1129_v34 }
 0x13d   :  { %v1000_v43 = vpack.c.bf16 %v906_v36, %v905_v37  ;;  %v793_v44 = vpop.permute.xlu1 %792 }
 0x13e   :  { %v788_v45 = vpop.permute.xlu0 %787  ;;  %2313 = vmatmul.mubr.bf16.gmra.mrb[28].mxu0 %v2661_v35  ;;  %v962_v47 = vmul.f32 %v793_v44, %v122_v38  ;;  %v2685_v38 = vcombine.low %v1117_v16, %v1121_v17  ;;  %v1131_v44 = vld [vmem:[%s4314_s0 + $0x300] sm:$0xff]  ;;  %v76_v16 = vld [vmem:[%s4315_s1 + $0x1e8] sm:$0xff] }
 0x13f   :  { %v961_v48 = vmul.f32 %v788_v45, %v121_v40  ;;  %2074 = vmatpush1.bf16.msra.mxu1 %v1000_v43  ;;  %2320 = vmatprep.mubr.bf16.mxu0 %v2670_v39  ;;  %v127_v43 = vld [vmem:[%s4315_s1 + $0x380] sm:$0xff] }
 0x140   :  { %2075 = vmatprep.subr.bf16.mxu1 %v2927_v0  ;;  %v1135_v45 = vld [vmem:[%s4314_s0 + $0x320] sm:$0xff] }
 0x141   :  { %v1028_v54 = vpack.c.bf16 %v962_v47, %v961_v48  ;;  %v523_v55 = vpop.permute.xlu1 %522  ;;  %v2698_v53 = vcombine.high %v1131_v44, %v1135_v45 }
 0x142   :  { %v518_v56 = vpop.permute.xlu0 %517  ;;  %1983 = vmatmul.mubr.bf16.gmra.mrb[32].mxu1 %v2665_v46  ;;  %v908_v58 = vmul.f32 %v523_v55, %v68_v49  ;;  %v2689_v49 = vcombine.low %v1123_v25, %v1127_v26  ;;  %v1133_v55 = vld [vmem:[%s4314_s0 + $0x310] sm:$0xff]  ;;  %v132_v25 = vld [vmem:[%s4315_s1 + $0x3a8] sm:$0xff] }
 0x143   :  { %v907_v59 = vmul.f32 %v518_v56, %v67_v51  ;;  %2404 = vmatpush1.bf16.msra.mxu0 %v1028_v54  ;;  %1990 = vmatprep.mubr.bf16.mxu1 %v2674_v50  ;;  %v73_v54 = vld [vmem:[%s4315_s1 + $0x1d0] sm:$0xff] }
 0x144   :  { %2405 = vmatprep.subr.bf16.mxu0 %v2927_v0  ;;  %v1137_v56 = vld [vmem:[%s4314_s0 + $0x330] sm:$0xff] }
 0x145   :  { %v1001_v4 = vpack.c.bf16 %v908_v58, %v907_v59  ;;  %v803_v5 = vpop.permute.xlu1 %802  ;;  %v2702_v1 = vcombine.high %v1133_v55, %v1137_v56 }
 0x146   :  { %v798_v6 = vpop.permute.xlu0 %797  ;;  %2321 = vmatmul.mubr.bf16.gmra.mrb[32].mxu0 %v2669_v57  ;;  %v964_v9 = vmul.f32 %v803_v5, %v124_v60  ;;  %v2693_v60 = vcombine.low %v1125_v33, %v1129_v34  ;;  %v1139_v5 = vld [vmem:[%s4314_s0 + $0x340] sm:$0xff]  ;;  %v78_v33 = vld [vmem:[%s4315_s1 + $0x1f8] sm:$0xff] }
 0x147   :  { %v963_v10 = vmul.f32 %v798_v6, %v123_v62  ;;  %2076 = vmatpush1.bf16.msra.mxu1 %v1001_v4  ;;  %2328 = vmatprep.mubr.bf16.mxu0 %v2678_v61  ;;  %v129_v4 = vld [vmem:[%s4315_s1 + $0x390] sm:$0xff]  ;;  %v1143_v6 = vld [vmem:[%s4314_s0 + $0x360] sm:$0xff] }
 0x148   :  { %2077 = vmatprep.subr.bf16.mxu1 %v2927_v0  ;;  %v2706_v17 = vcombine.high %v1139_v5, %v1143_v6 }
 0x149   :  { %v1029_v18 = vpack.c.bf16 %v964_v9, %v963_v10  ;;  %v533_v2 = vpop.permute.xlu1 %532 }
 0x14a   :  { %v528_v3 = vpop.permute.xlu0 %527  ;;  %1991 = vmatmul.mubr.bf16.gmra.mrb[36].mxu1 %v2673_v8  ;;  %v910_v20 = vmul.f32 %v533_v2, %v70_v11  ;;  %v2697_v11 = vcombine.low %v1131_v44, %v1135_v45  ;;  %v1141_v2 = vld [vmem:[%s4314_s0 + $0x350] sm:$0xff]  ;;  %v134_v44 = vld [vmem:[%s4315_s1 + $0x3b8] sm:$0xff] }
 0x14b   :  { %v909_v21 = vmul.f32 %v528_v3, %v69_v15  ;;  %2406 = vmatpush1.bf16.msra.mxu0 %v1029_v18  ;;  %1998 = vmatprep.mubr.bf16.mxu1 %v2682_v12  ;;  %v75_v18 = vld [vmem:[%s4315_s1 + $0x1e0] sm:$0xff]  ;;  %v1145_v3 = vld [vmem:[%s4314_s0 + $0x370] sm:$0xff] }
 0x14c   :  { %2407 = vmatprep.subr.bf16.mxu0 %v2927_v0  ;;  %v2710_v26 = vcombine.high %v1141_v2, %v1145_v3 }
 0x14d   :  { %v1002_v13 = vpack.c.bf16 %v910_v20, %v909_v21  ;;  %v813_v14 = vpop.permute.xlu1 %812 }
 0x14e   :  { %v808_v19 = vpop.permute.xlu0 %807  ;;  %2329 = vmatmul.mubr.bf16.gmra.mrb[36].mxu0 %v2677_v7  ;;  %v966_v28 = vmul.f32 %v813_v14, %v126_v22  ;;  %v2701_v22 = vcombine.low %v1133_v55, %v1137_v56  ;;  %v1147_v14 = vld [vmem:[%s4314_s0 + $0x380] sm:$0xff]  ;;  %v1161_v56 = vld [vmem:[%s4314_s0 + $0x3f0] sm:$0xff] }
 0x14f   :  { %v965_v29 = vmul.f32 %v808_v19, %v125_v24  ;;  %2078 = vmatpush1.bf16.msra.mxu1 %v1002_v13  ;;  %2336 = vmatprep.mubr.bf16.mxu0 %v2686_v23  ;;  %v131_v13 = vld [vmem:[%s4315_s1 + $0x3a0] sm:$0xff] }
 0x150   :  { %2079 = vmatprep.subr.bf16.mxu1 %v2927_v0  ;;  %v1151_v19 = vld [vmem:[%s4314_s0 + $0x3a0] sm:$0xff] }
 0x151   :  { %v1030_v35 = vpack.c.bf16 %v966_v28, %v965_v29  ;;  %v543_v36 = vpop.permute.xlu1 %542  ;;  %v2714_v34 = vcombine.high %v1147_v14, %v1151_v19 }
 0x152   :  { %v538_v37 = vpop.permute.xlu0 %537  ;;  %1999 = vmatmul.mubr.bf16.gmra.mrb[40].mxu1 %v2681_v27  ;;  %v912_v39 = vmul.f32 %v543_v36, %v72_v30  ;;  %v2705_v30 = vcombine.low %v1139_v5, %v1143_v6  ;;  %v1149_v36 = vld [vmem:[%s4314_s0 + $0x390] sm:$0xff] }
 0x153   :  { %v911_v40 = vmul.f32 %v538_v37, %v71_v32  ;;  %2408 = vmatpush1.bf16.msra.mxu0 %v1030_v35  ;;  %2006 = vmatprep.mubr.bf16.mxu1 %v2690_v31  ;;  %v77_v35 = vld [vmem:[%s4315_s1 + $0x1f0] sm:$0xff] }
 0x154   :  { %2409 = vmatprep.subr.bf16.mxu0 %v2927_v0  ;;  %v1153_v37 = vld [vmem:[%s4314_s0 + $0x3b0] sm:$0xff] }
 0x155   :  { %v1003_v46 = vpack.c.bf16 %v912_v39, %v911_v40  ;;  %v823_v47 = vpop.permute.xlu1 %822  ;;  %v2718_v45 = vcombine.high %v1149_v36, %v1153_v37 }
 0x156   :  { %v818_v48 = vpop.permute.xlu0 %817  ;;  %2337 = vmatmul.mubr.bf16.gmra.mrb[40].mxu0 %v2685_v38  ;;  %v968_v50 = vmul.f32 %v823_v47, %v128_v41  ;;  %v2709_v41 = vcombine.low %v1141_v2, %v1145_v3  ;;  %v1155_v47 = vld [vmem:[%s4314_s0 + $0x3c0] sm:$0xff]  ;;  %v1048_v2 = vld [vmem:[%s4314_s0 + $0x68] sm:$0xff] }
 0x157   :  { %v967_v51 = vmul.f32 %v818_v48, %v127_v43  ;;  %2080 = vmatpush1.bf16.msra.mxu1 %v1003_v46  ;;  %2344 = vmatprep.mubr.bf16.mxu0 %v2694_v42  ;;  %v133_v46 = vld [vmem:[%s4315_s1 + $0x3b0] sm:$0xff]  ;;  %v1159_v48 = vld [vmem:[%s4314_s0 + $0x3e0] sm:$0xff] }
 0x158   :  { %2081 = vmatprep.subr.bf16.mxu1 %v2927_v0  ;;  %v2722_v55 = vcombine.high %v1155_v47, %v1159_v48 }
 0x159   :  { %v1031_v57 = vpack.c.bf16 %v968_v50, %v967_v51  ;;  %v553_v58 = vpop.permute.xlu1 %552 }
 0x15a   :  { %v548_v59 = vpop.permute.xlu0 %547  ;;  %2007 = vmatmul.mubr.bf16.gmra.mrb[44].mxu1 %v2689_v49  ;;  %v914_v61 = vmul.f32 %v553_v58, %v74_v52  ;;  %v2713_v52 = vcombine.low %v1147_v14, %v1151_v19  ;;  %v2717_v58 = vcombine.low %v1149_v36, %v1153_v37  ;;  %v1054_v14 = vld [vmem:[%s4314_s0 + $0x98] sm:$0xff]  ;;  %v1068_v37 = vld [vmem:[%s4314_s0 + $0x108] sm:$0xff] }
 0x15b   :  { %v913_v62 = vmul.f32 %v548_v59, %v73_v54  ;;  %2410 = vmatpush1.bf16.msra.mxu0 %v1031_v57  ;;  %2014 = vmatprep.mubr.bf16.mxu1 %v2698_v53  ;;  %v1058_v19 = vld [vmem:[%s4314_s0 + $0xb8] sm:$0xff] }
 0x15c   :  { %2411 = vmatprep.subr.bf16.mxu0 %v2927_v0 }
 0x15d   :  { %v1004_v8 = vpack.c.bf16 %v914_v61, %v913_v62  ;;  %v833_v9 = vpop.permute.xlu1 %832  ;;  %v1167_v61 = vld [vmem:[%s4314_s0 + $0x420] sm:$0xff]  ;;  %v2721_v62 = vcombine.low %v1155_v47, %v1159_v48 }
 0x15e   :  { %v828_v10 = vpop.permute.xlu0 %827  ;;  %2345 = vmatmul.mubr.bf16.gmra.mrb[44].mxu0 %v2693_v60  ;;  %v970_v12 = vmul.f32 %v833_v9, %v130_v63  ;;  %v1163_v60 = vld [vmem:[%s4314_s0 + $0x400] sm:$0xff]  ;;  %v1040_v9 = vld [vmem:[%s4314_s0 + $0x28] sm:$0xff] }
 0x15f   :  { %v969_v15 = vmul.f32 %v828_v10, %v129_v4  ;;  %2082 = vmatpush1.bf16.msra.mxu1 %v1004_v8  ;;  %2352 = vmatprep.mubr.bf16.mxu0 %v2702_v1  ;;  %v2730_v63 = vcombine.high %v1163_v60, %v1167_v61  ;;  %v1165_v1 = vld [vmem:[%s4314_s0 + $0x410] sm:$0xff]  ;;  %v1036_v8 = vld [vmem:[%s4314_s0 + $0x8] sm:$0xff]  ;;  %v2729_v10 = vcombine.low %v1163_v60, %v1167_v61 }
 0x160   :  { %2083 = vmatprep.subr.bf16.mxu1 %v2927_v0  ;;  %v1169_v4 = vld [vmem:[%s4314_s0 + $0x430] sm:$0xff]  ;;  %v2603_v3 = vcombine.low %v1036_v8, %v1040_v9  ;;  %v1092_v60 = vld [vmem:[%s4314_s0 + $0x1c8] sm:$0xff] }
 0x161   :  { %v1032_v7 = vpack.c.bf16 %v970_v12, %v969_v15  ;;  %v563_v20 = vpop.permute.xlu1 %562  ;;  %v2734_v6 = vcombine.high %v1165_v1, %v1169_v4  ;;  %v1038_v12 = vld [vmem:[%s4314_s0 + $0x18] sm:$0xff]  ;;  %v1096_v61 = vld [vmem:[%s4314_s0 + $0x1e8] sm:$0xff] }
 0x162   :  { %v558_v21 = vpop.permute.xlu0 %557  ;;  %2015 = vmatmul.mubr.bf16.gmra.mrb[48].mxu1 %v2697_v11  ;;  %v916_v23 = vmul.f32 %v563_v20, %v76_v16  ;;  %v2604_v11 = vcombine.high %v1036_v8, %v1040_v9  ;;  %v1042_v15 = vld [vmem:[%s4314_s0 + $0x38] sm:$0xff]  ;;  %v2733_v16 = vcombine.low %v1165_v1, %v1169_v4  ;;  %v1100_v8 = vld [vmem:[%s4314_s0 + $0x208] sm:$0xff] }
 0x163   :  { %v915_v24 = vmul.f32 %v558_v21, %v75_v18  ;;  %2412 = vmatpush1.bf16.msra.mxu0 %v1032_v7  ;;  %2022 = vmatprep.mubr.bf16.mxu1 %v2706_v17  ;;  %v2608_v17 = vcombine.high %v1038_v12, %v1042_v15  ;;  %v1044_v18 = vld [vmem:[%s4314_s0 + $0x48] sm:$0xff]  ;;  %v1046_v20 = vld [vmem:[%s4314_s0 + $0x58] sm:$0xff] }
 0x164   :  { %2413 = vmatprep.subr.bf16.mxu0 %v2927_v0  ;;  %v2612_v7 = vcombine.high %v1044_v18, %v1048_v2  ;;  %v1050_v21 = vld [vmem:[%s4314_s0 + $0x78] sm:$0xff]  ;;  %v1104_v9 = vld [vmem:[%s4314_s0 + $0x228] sm:$0xff] }
 0x165   :  { %v1005_v27 = vpack.c.bf16 %v916_v23, %v915_v24  ;;  %v843_v28 = vpop.permute.xlu1 %842  ;;  %v2616_v23 = vcombine.high %v1046_v20, %v1050_v21  ;;  %v1052_v24 = vld [vmem:[%s4314_s0 + $0x88] sm:$0xff]  ;;  %v1094_v1 = vld [vmem:[%s4314_s0 + $0x1d8] sm:$0xff] }
 0x166   :  { %v838_v29 = vpop.permute.xlu0 %837  ;;  %2353 = vmatmul.mubr.bf16.gmra.mrb[48].mxu0 %v2701_v22  ;;  %v972_v31 = vmul.f32 %v843_v28, %v132_v25  ;;  %v2607_v22 = vcombine.low %v1038_v12, %v1042_v15  ;;  %v1056_v25 = vld [vmem:[%s4314_s0 + $0xa8] sm:$0xff]  ;;  %v2624_v28 = vcombine.high %v1054_v14, %v1058_v19  ;;  %v1098_v4 = vld [vmem:[%s4314_s0 + $0x1f8] sm:$0xff] }
 0x167   :  { %v971_v32 = vmul.f32 %v838_v29, %v131_v13  ;;  %2084 = vmatpush1.bf16.msra.mxu1 %v1005_v27  ;;  %2360 = vmatprep.mubr.bf16.mxu0 %v2710_v26  ;;  %v2611_v26 = vcombine.low %v1044_v18, %v1048_v2  ;;  %v2620_v13 = vcombine.high %v1052_v24, %v1056_v25  ;;  %v1060_v29 = vld [vmem:[%s4314_s0 + $0xc8] sm:$0xff]  ;;  %v1102_v12 = vld [vmem:[%s4314_s0 + $0x218] sm:$0xff] }
 0x168   :  { %2085 = vmatprep.subr.bf16.mxu1 %v2927_v0  ;;  %v2615_v27 = vcombine.low %v1046_v20, %v1050_v21  ;;  %v1106_v15 = vld [vmem:[%s4314_s0 + $0x238] sm:$0xff]  ;;  %v1108_v18 = vld [vmem:[%s4314_s0 + $0x248] sm:$0xff] }
 0x169   :  { %v1033_v38 = vpack.c.bf16 %v972_v31, %v971_v32  ;;  %v573_v39 = vpop.permute.xlu1 %572  ;;  %v2619_v31 = vcombine.low %v1052_v24, %v1056_v25  ;;  %v1112_v2 = vld [vmem:[%s4314_s0 + $0x268] sm:$0xff]  ;;  %v1110_v20 = vld [vmem:[%s4314_s0 + $0x258] sm:$0xff] }
 0x16a   :  { %v568_v40 = vpop.permute.xlu0 %567  ;;  %2023 = vmatmul.mubr.bf16.gmra.mrb[52].mxu1 %v2705_v30  ;;  %v918_v42 = vmul.f32 %v573_v39, %v78_v33  ;;  %v1064_v30 = vld [vmem:[%s4314_s0 + $0xe8] sm:$0xff]  ;;  %v1062_v33 = vld [vmem:[%s4314_s0 + $0xd8] sm:$0xff] }
 0x16b   :  { %v917_v43 = vmul.f32 %v568_v40, %v77_v35  ;;  %2414 = vmatpush1.bf16.msra.mxu0 %v1033_v38  ;;  %2030 = vmatprep.mubr.bf16.mxu1 %v2714_v34  ;;  %v2628_v32 = vcombine.high %v1060_v29, %v1064_v30  ;;  %v1066_v34 = vld [vmem:[%s4314_s0 + $0xf8] sm:$0xff]  ;;  %v2623_v35 = vcombine.low %v1054_v14, %v1058_v19  ;;  %v1072_v38 = vld [vmem:[%s4314_s0 + $0x128] sm:$0xff] }
 0x16c   :  { %2415 = vmatprep.subr.bf16.mxu0 %v2927_v0  ;;  %v1157_v0 = vld [vmem:[%s4314_s0 + $0x3d0] sm:$0xff]  ;;  %v2632_v36 = vcombine.high %v1062_v33, %v1066_v34  ;;  %v2627_v39 = vcombine.low %v1060_v29, %v1064_v30  ;;  %v2636_v40 = vcombine.high %v1068_v37, %v1072_v38  ;;  %v2635_v47 = vcombine.low %v1068_v37, %v1072_v38  ;;  %v1114_v21 = vld [vmem:[%s4314_s0 + $0x278] sm:$0xff]  ;;  %v1116_v24 = vld [vmem:[%s4314_s0 + $0x288] sm:$0xff] }
 0x16d   :  { %v1006_v49 = vpack.c.bf16 %v918_v42, %v917_v43  ;;  %v853_v50 = vpop.permute.xlu1 %852  ;;  %v2726_v59 = vcombine.high %v1157_v0, %v1161_v56  ;;  %v2725_v5 = vcombine.low %v1157_v0, %v1161_v56  ;;  %v1074_v42 = vld [vmem:[%s4314_s0 + $0x138] sm:$0xff]  ;;  %v2631_v43 = vcombine.low %v1062_v33, %v1066_v34  ;;  %v1120_v25 = vld [vmem:[%s4314_s0 + $0x2a8] sm:$0xff] }
 0x16e   :  { %v848_v51 = vpop.permute.xlu0 %847  ;;  %2361 = vmatmul.mubr.bf16.gmra.mrb[52].mxu0 %v2709_v41  ;;  %v974_v53 = vmul.f32 %v853_v50, %v134_v44  ;;  %v1070_v41 = vld [vmem:[%s4314_s0 + $0x118] sm:$0xff]  ;;  %v1124_v29 = vld [vmem:[%s4314_s0 + $0x2c8] sm:$0xff] }
 0x16f   :  { %v973_v54 = vmul.f32 %v848_v51, %v133_v46  ;;  %2086 = vmatpush1.bf16.msra.mxu1 %v1006_v49  ;;  %2368 = vmatprep.mubr.bf16.mxu0 %v2718_v45  ;;  %v2640_v44 = vcombine.high %v1070_v41, %v1074_v42  ;;  %v1076_v45 = vld [vmem:[%s4314_s0 + $0x148] sm:$0xff]  ;;  %v1078_v49 = vld [vmem:[%s4314_s0 + $0x158] sm:$0xff]  ;;  %v2639_v51 = vcombine.low %v1070_v41, %v1074_v42 }
 0x170   :  { %v1080_v46 = vld [vmem:[%s4314_s0 + $0x168] sm:$0xff]  ;;  %v1082_v50 = vld [vmem:[%s4314_s0 + $0x178] sm:$0xff] }
 0x171   :  { %v1034_v57 = vpack.c.bf16 %v974_v53, %v973_v54  ;;  %v2644_v48 = vcombine.high %v1076_v45, %v1080_v46  ;;  %v1084_v53 = vld [vmem:[%s4314_s0 + $0x188] sm:$0xff]  ;;  %v1086_v56 = vld [vmem:[%s4314_s0 + $0x198] sm:$0xff] }
 0x172   :  { %2031 = vmatmul.mubr.bf16.gmra.mrb[56].mxu1 %v2713_v52  ;;  %v2648_v52 = vcombine.high %v1078_v49, %v1082_v50  ;;  %v1088_v54 = vld [vmem:[%s4314_s0 + $0x1a8] sm:$0xff]  ;;  %v1118_v14 = vld [vmem:[%s4314_s0 + $0x298] sm:$0xff] }
 0x173   :  { %2416 = vmatpush1.bf16.msra.mxu0 %v1034_v57  ;;  %2038 = vmatprep.mubr.bf16.mxu1 %v2722_v55  ;;  %v2643_v55 = vcombine.low %v1076_v45, %v1080_v46  ;;  %v2652_v0 = vcombine.high %v1084_v53, %v1088_v54  ;;  %v1090_v57 = vld [vmem:[%s4314_s0 + $0x1b8] sm:$0xff]  ;;  %v1128_v30 = vld [vmem:[%s4314_s0 + $0x2e8] sm:$0xff] }
 0x174   :  { %v1122_v19 = vld [vmem:[%s4314_s0 + $0x2b8] sm:$0xff]  ;;  %v1132_v37 = vld [vmem:[%s4314_s0 + $0x308] sm:$0xff] }
 0x175   :  { %v1126_v33 = vld [vmem:[%s4314_s0 + $0x2d8] sm:$0xff]  ;;  %v1136_v38 = vld [vmem:[%s4314_s0 + $0x328] sm:$0xff] }
 0x176   :  { %2369 = vmatmul.mubr.bf16.gmra.mrb[56].mxu0 %v2717_v58  ;;  %v2647_v58 = vcombine.low %v1078_v49, %v1082_v50  ;;  %v1130_v34 = vld [vmem:[%s4314_s0 + $0x2f8] sm:$0xff]  ;;  %v1140_v45 = vld [vmem:[%s4314_s0 + $0x348] sm:$0xff] }
 0x177   :  { %2376 = vmatprep.mubr.bf16.mxu0 %v2726_v59  ;;  %v2656_v59 = vcombine.high %v1086_v56, %v1090_v57  ;;  %v1134_v41 = vld [vmem:[%s4314_s0 + $0x318] sm:$0xff]  ;;  %v1144_v46 = vld [vmem:[%s4314_s0 + $0x368] sm:$0xff] }
 0x178   :  { %v1138_v42 = vld [vmem:[%s4314_s0 + $0x338] sm:$0xff] }
 0x179   :  { %v1142_v49 = vld [vmem:[%s4314_s0 + $0x358] sm:$0xff] }
 0x17a   :  { %2039 = vmatmul.mubr.bf16.gmra.mrb[60].mxu1 %v2721_v62  ;;  %v2651_v62 = vcombine.low %v1084_v53, %v1088_v54  ;;  %v1146_v50 = vld [vmem:[%s4314_s0 + $0x378] sm:$0xff]  ;;  %v1148_v53 = vld [vmem:[%s4314_s0 + $0x388] sm:$0xff] }
 0x17b   :  { %2046 = vmatprep.mubr.bf16.mxu1 %v2730_v63  ;;  %v2660_v63 = vcombine.high %v1092_v60, %v1096_v61  ;;  %v1152_v54 = vld [vmem:[%s4314_s0 + $0x3a8] sm:$0xff] }
 0x17e   :  { %2377 = vmatmul.mubr.bf16.gmra.mrb[60].mxu0 %v2725_v5  ;;  %v2655_v5 = vcombine.low %v1086_v56, %v1090_v57  ;;  %v1150_v56 = vld [vmem:[%s4314_s0 + $0x398] sm:$0xff] }
 0x17f   :  { %2384 = vmatprep.mubr.bf16.mxu0 %v2734_v6  ;;  %v2664_v6 = vcombine.high %v1094_v1, %v1098_v4  ;;  %v1154_v57 = vld [vmem:[%s4314_s0 + $0x3b8] sm:$0xff] }
 0x182   :  { %2047 = vmatmul.mubr.bf16.gmra.mrb[64].mxu1 %v2729_v10  ;;  %v2659_v10 = vcombine.low %v1092_v60, %v1096_v61  ;;  %v1156_v60 = vld [vmem:[%s4314_s0 + $0x3c8] sm:$0xff] }
 0x183   :  { %2087 = vmatprep.mubr.bf16.mxu1 %v2604_v11  ;;  %v2668_v11 = vcombine.high %v1100_v8, %v1104_v9  ;;  %v1160_v61 = vld [vmem:[%s4314_s0 + $0x3e8] sm:$0xff] }
 0x186   :  { %2385 = vmatmul.mubr.bf16.gmra.mrb[64].mxu0 %v2733_v16  ;;  %v2663_v16 = vcombine.low %v1094_v1, %v1098_v4  ;;  %v1158_v1 = vld [vmem:[%s4314_s0 + $0x3d8] sm:$0xff] }
 0x187   :  { %2737 = vmatprep.mubr.msk.bf16.mxu0 %vm1834_vm0, %v2608_v17  ;;  %v2672_v17 = vcombine.high %v1102_v12, %v1106_v15  ;;  %v1162_v4 = vld [vmem:[%s4314_s0 + $0x3f8] sm:$0xff] }
 0x18a   :  { %2088 = vmatmul.mubr.bf16.vlgmr.msra.gmra.mrb[0].mxu1 %v2603_v3  ;;  %v2667_v3 = vcombine.low %v1100_v8, %v1104_v9  ;;  %v1164_v8 = vld [vmem:[%s4314_s0 + $0x408] sm:$0xff] }
 0x18b   :  { %2095 = vmatprep.mubr.bf16.mxu1 %v2612_v7  ;;  %v2676_v7 = vcombine.high %v1108_v18, %v1112_v2  ;;  %v1168_v9 = vld [vmem:[%s4314_s0 + $0x428] sm:$0xff] }
 0x18e   :  { %2426 = vmatmul.mubr.bf16.vlgmr.msra.gmra.mrb[0].mxu0 %v2607_v22  ;;  %v2671_v22 = vcombine.low %v1102_v12, %v1106_v15  ;;  %v1166_v12 = vld [vmem:[%s4314_s0 + $0x418] sm:$0xff] }
 0x18f   :  { %2738 = vmatprep.mubr.msk.bf16.mxu0 %vm1834_vm0, %v2616_v23  ;;  %v2680_v23 = vcombine.high %v1110_v20, %v1114_v21  ;;  %v1170_v15 = vld [vmem:[%s4314_s0 + $0x438] sm:$0xff] }
 0x192   :  { %2096 = vmatmul.mubr.bf16.gmra.mrb[4].mxu1 %v2611_v26  ;;  %v2675_v26 = vcombine.low %v1108_v18, %v1112_v2  ;;  %v2731_v18 = vcombine.low %v1164_v8, %v1168_v9  ;;  %v2735_v2 = vcombine.low %v1166_v12, %v1170_v15 }
 0x193   :  { %2103 = vmatprep.mubr.bf16.mxu1 %v2620_v13  ;;  %v2684_v13 = vcombine.high %v1116_v24, %v1120_v25 }
 0x196   :  { %2434 = vmatmul.mubr.bf16.gmra.mrb[4].mxu0 %v2615_v27  ;;  %v2679_v27 = vcombine.low %v1110_v20, %v1114_v21 }
 0x197   :  { %2739 = vmatprep.mubr.msk.bf16.mxu0 %vm1834_vm0, %v2624_v28  ;;  %v2688_v28 = vcombine.high %v1118_v14, %v1122_v19 }
 0x19a   :  { %2104 = vmatmul.mubr.bf16.gmra.mrb[8].mxu1 %v2619_v31  ;;  %v2683_v31 = vcombine.low %v1116_v24, %v1120_v25 }
 0x19b   :  { %2111 = vmatprep.mubr.bf16.mxu1 %v2628_v32  ;;  %v2692_v32 = vcombine.high %v1124_v29, %v1128_v30 }
 0x19e   :  { %2442 = vmatmul.mubr.bf16.gmra.mrb[8].mxu0 %v2623_v35  ;;  %v2687_v35 = vcombine.low %v1118_v14, %v1122_v19 }
 0x19f   :  { %2740 = vmatprep.mubr.msk.bf16.mxu0 %vm1834_vm0, %v2632_v36  ;;  %v2696_v36 = vcombine.high %v1126_v33, %v1130_v34 }
 0x1a2   :  { %2112 = vmatmul.mubr.bf16.gmra.mrb[12].mxu1 %v2627_v39  ;;  %v2691_v39 = vcombine.low %v1124_v29, %v1128_v30 }
 0x1a3   :  { %2119 = vmatprep.mubr.bf16.mxu1 %v2636_v40  ;;  %v2700_v40 = vcombine.high %v1132_v37, %v1136_v38 }
 0x1a6   :  { %2450 = vmatmul.mubr.bf16.gmra.mrb[12].mxu0 %v2631_v43  ;;  %v2695_v43 = vcombine.low %v1126_v33, %v1130_v34 }
 0x1a7   :  { %2741 = vmatprep.mubr.msk.bf16.mxu0 %vm1834_vm0, %v2640_v44  ;;  %v2704_v44 = vcombine.high %v1134_v41, %v1138_v42 }
 0x1aa   :  { %2120 = vmatmul.mubr.bf16.gmra.mrb[16].mxu1 %v2635_v47  ;;  %v2699_v47 = vcombine.low %v1132_v37, %v1136_v38 }
 0x1ab   :  { %2127 = vmatprep.mubr.bf16.mxu1 %v2644_v48  ;;  %v2708_v48 = vcombine.high %v1140_v45, %v1144_v46 }
 0x1ae   :  { %2458 = vmatmul.mubr.bf16.gmra.mrb[16].mxu0 %v2639_v51  ;;  %v2703_v51 = vcombine.low %v1134_v41, %v1138_v42 }
 0x1af   :  { %2742 = vmatprep.mubr.msk.bf16.mxu0 %vm1834_vm0, %v2648_v52  ;;  %v2712_v52 = vcombine.high %v1142_v49, %v1146_v50 }
 0x1b2   :  { %2128 = vmatmul.mubr.bf16.gmra.mrb[20].mxu1 %v2643_v55  ;;  %v2707_v55 = vcombine.low %v1140_v45, %v1144_v46 }
 0x1b3   :  { %2135 = vmatprep.mubr.bf16.mxu1 %v2652_v0  ;;  %v2716_v0 = vcombine.high %v1148_v53, %v1152_v54 }
 0x1b6   :  { %2466 = vmatmul.mubr.bf16.gmra.mrb[20].mxu0 %v2647_v58  ;;  %v2711_v58 = vcombine.low %v1142_v49, %v1146_v50 }
 0x1b7   :  { %2743 = vmatprep.mubr.msk.bf16.mxu0 %vm1834_vm0, %v2656_v59  ;;  %v2720_v59 = vcombine.high %v1150_v56, %v1154_v57 }
 0x1ba   :  { %2136 = vmatmul.mubr.bf16.gmra.mrb[24].mxu1 %v2651_v62  ;;  %v2715_v62 = vcombine.low %v1148_v53, %v1152_v54 }
 0x1bb   :  { %2143 = vmatprep.mubr.bf16.mxu1 %v2660_v63  ;;  %v2724_v63 = vcombine.high %v1156_v60, %v1160_v61 }
 0x1be   :  { %2474 = vmatmul.mubr.bf16.gmra.mrb[24].mxu0 %v2655_v5  ;;  %v2719_v5 = vcombine.low %v1150_v56, %v1154_v57 }
 0x1bf   :  { %2744 = vmatprep.mubr.msk.bf16.mxu0 %vm1834_vm0, %v2664_v6  ;;  %v2728_v6 = vcombine.high %v1158_v1, %v1162_v4 }
 0x1c2   :  { %2144 = vmatmul.mubr.bf16.gmra.mrb[28].mxu1 %v2659_v10  ;;  %v2723_v10 = vcombine.low %v1156_v60, %v1160_v61 }
 0x1c3   :  { %2151 = vmatprep.mubr.bf16.mxu1 %v2668_v11  ;;  %v2732_v11 = vcombine.high %v1164_v8, %v1168_v9 }
 0x1c6   :  { %2482 = vmatmul.mubr.bf16.gmra.mrb[28].mxu0 %v2663_v16  ;;  %v2727_v16 = vcombine.low %v1158_v1, %v1162_v4 }
 0x1c7   :  { %2745 = vmatprep.mubr.msk.bf16.mxu0 %vm1834_vm0, %v2672_v17  ;;  %v2736_v17 = vcombine.high %v1166_v12, %v1170_v15 }
 0x1ca   :  { %2152 = vmatmul.mubr.bf16.gmra.mrb[32].mxu1 %v2667_v3 }
 0x1cb   :  { %2159 = vmatprep.mubr.bf16.mxu1 %v2676_v7 }
 0x1ce   :  { %2490 = vmatmul.mubr.bf16.gmra.mrb[32].mxu0 %v2671_v22 }
 0x1cf   :  { %2746 = vmatprep.mubr.msk.bf16.mxu0 %vm1834_vm0, %v2680_v23 }
 0x1d2   :  { %2160 = vmatmul.mubr.bf16.gmra.mrb[36].mxu1 %v2675_v26 }
 0x1d3   :  { %2167 = vmatprep.mubr.bf16.mxu1 %v2684_v13 }
 0x1d6   :  { %2498 = vmatmul.mubr.bf16.gmra.mrb[36].mxu0 %v2679_v27 }
 0x1d7   :  { %2747 = vmatprep.mubr.msk.bf16.mxu0 %vm1834_vm0, %v2688_v28 }
 0x1da   :  { %2168 = vmatmul.mubr.bf16.gmra.mrb[40].mxu1 %v2683_v31 }
 0x1db   :  { %2175 = vmatprep.mubr.bf16.mxu1 %v2692_v32 }
 0x1de   :  { %2506 = vmatmul.mubr.bf16.gmra.mrb[40].mxu0 %v2687_v35 }
 0x1df   :  { %2748 = vmatprep.mubr.msk.bf16.mxu0 %vm1834_vm0, %v2696_v36 }
 0x1e2   :  { %2176 = vmatmul.mubr.bf16.gmra.mrb[44].mxu1 %v2691_v39 }
 0x1e3   :  { %2183 = vmatprep.mubr.bf16.mxu1 %v2700_v40 }
 0x1e6   :  { %2514 = vmatmul.mubr.bf16.gmra.mrb[44].mxu0 %v2695_v43 }
 0x1e7   :  { %2749 = vmatprep.mubr.msk.bf16.mxu0 %vm1834_vm0, %v2704_v44 }
 0x1ea   :  { %2184 = vmatmul.mubr.bf16.gmra.mrb[48].mxu1 %v2699_v47 }
 0x1eb   :  { %2191 = vmatprep.mubr.bf16.mxu1 %v2708_v48 }
 0x1ee   :  { %2522 = vmatmul.mubr.bf16.gmra.mrb[48].mxu0 %v2703_v51 }
 0x1ef   :  { %2750 = vmatprep.mubr.msk.bf16.mxu0 %vm1834_vm0, %v2712_v52 }
 0x1f2   :  { %2192 = vmatmul.mubr.bf16.gmra.mrb[52].mxu1 %v2707_v55 }
 0x1f3   :  { %2199 = vmatprep.mubr.bf16.mxu1 %v2716_v0 }
 0x1f6   :  { %2530 = vmatmul.mubr.bf16.gmra.mrb[52].mxu0 %v2711_v58 }
 0x1f7   :  { %2751 = vmatprep.mubr.msk.bf16.mxu0 %vm1834_vm0, %v2720_v59 }
 0x1fa   :  { %2200 = vmatmul.mubr.bf16.gmra.mrb[56].mxu1 %v2715_v62 }
 0x1fb   :  { %2207 = vmatprep.mubr.bf16.mxu1 %v2724_v63 }
 0x1fe   :  { %2538 = vmatmul.mubr.bf16.gmra.mrb[56].mxu0 %v2719_v5 }
 0x1ff   :  { %2752 = vmatprep.mubr.msk.bf16.mxu0 %vm1834_vm0, %v2728_v6 }
 0x202   :  { %2208 = vmatmul.mubr.bf16.gmra.mrb[60].mxu1 %v2723_v10 }
 0x203   :  { %2215 = vmatprep.mubr.bf16.mxu1 %v2732_v11 }
 0x206   :  { %2546 = vmatmul.mubr.bf16.gmra.mrb[60].mxu0 %v2727_v16 }
 0x207   :  { %2753 = vmatprep.mubr.msk.bf16.mxu0 %vm1834_vm0, %v2736_v17 }
 0x20a   :  { %2216 = vmatmul.mubr.bf16.gmra.mrb[64].mxu1 %v2731_v18 }
 0x20e   :  { %2554 = vmatmul.mubr.bf16.gmra.mrb[64].mxu0 %v2735_v2 }
 0x25d   :  { %v2089_v3 = vpop.f32.mrb[0].mxu1 }
 0x25e   :  { %v2091_v7 = vpop.f32.mrb[1].mxu1 }
 0x25f   :  { %v2092_v20 = vpop.f32.mrb[2].mxu1 }
 0x260   :  { %v2094_v21 = vpop.f32.mrb[3].mxu1 }
 0x261   :  { %v2427_v22 = vpop.f32.mrb[0].mxu0 }
 0x262   :  { %v2754_v23 = vadd.f32 %v2427_v22, %v2089_v3  ;;  %v2429_v24 = vpop.f32.mrb[1].mxu0 }
 0x263   :  { %v2430_v25 = vpop.f32.mrb[2].mxu0 }
 0x264   :  { %2563 = vst.msk [vmem:[%s4316_s3] sm:$0xff] %vm2562_vm1, %v2754_v23  ;;  %v2755_v26 = vadd.f32 %v2430_v25, %v2092_v20  ;;  %v2432_v13 = vpop.f32.mrb[3].mxu0 }
 0x265   :  { %v2097_v14 = vpop.f32.mrb[4].mxu1 }
 0x266   :  { %2564 = vst.msk [vmem:[%s4316_s3 + $0x8] sm:$0xff] %vm2562_vm1, %v2755_v26  ;;  %v2099_v19 = vpop.f32.mrb[5].mxu1 }
 0x267   :  { %v2100_v27 = vpop.f32.mrb[6].mxu1 }
 0x268   :  { %v2102_v28 = vpop.f32.mrb[7].mxu1 }
 0x269   :  { %v2435_v29 = vpop.f32.mrb[4].mxu0 }
 0x26a   :  { %v2756_v30 = vadd.f32 %v2435_v29, %v2097_v14  ;;  %v2437_v31 = vpop.f32.mrb[5].mxu0 }
 0x26b   :  { %v2438_v32 = vpop.f32.mrb[6].mxu0 }
 0x26c   :  { %2565 = vst.msk [vmem:[%s4316_s3 + $0x10] sm:$0xff] %vm2562_vm1, %v2756_v30  ;;  %v2757_v33 = vadd.f32 %v2438_v32, %v2100_v27  ;;  %v2440_v34 = vpop.f32.mrb[7].mxu0 }
 0x26d   :  { %v2105_v35 = vpop.f32.mrb[8].mxu1 }
 0x26e   :  { %2566 = vst.msk [vmem:[%s4316_s3 + $0x18] sm:$0xff] %vm2562_vm1, %v2757_v33  ;;  %v2107_v36 = vpop.f32.mrb[9].mxu1 }
 0x26f   :  { %v2108_v37 = vpop.f32.mrb[10].mxu1 }
 0x270   :  { %v2110_v38 = vpop.f32.mrb[11].mxu1 }
 0x271   :  { %v2443_v39 = vpop.f32.mrb[8].mxu0 }
 0x272   :  { %v2758_v40 = vadd.f32 %v2443_v39, %v2105_v35  ;;  %v2445_v41 = vpop.f32.mrb[9].mxu0 }
 0x273   :  { %v2446_v42 = vpop.f32.mrb[10].mxu0 }
 0x274   :  { %2567 = vst.msk [vmem:[%s4316_s3 + $0x20] sm:$0xff] %vm2562_vm1, %v2758_v40  ;;  %v2759_v43 = vadd.f32 %v2446_v42, %v2108_v37  ;;  %v2448_v44 = vpop.f32.mrb[11].mxu0 }
 0x275   :  { %v2113_v45 = vpop.f32.mrb[12].mxu1 }
 0x276   :  { %2568 = vst.msk [vmem:[%s4316_s3 + $0x28] sm:$0xff] %vm2562_vm1, %v2759_v43  ;;  %v2115_v46 = vpop.f32.mrb[13].mxu1 }
 0x277   :  { %v2116_v47 = vpop.f32.mrb[14].mxu1 }
 0x278   :  { %v2118_v48 = vpop.f32.mrb[15].mxu1 }
 0x279   :  { %v2451_v49 = vpop.f32.mrb[12].mxu0 }
 0x27a   :  { %v2760_v50 = vadd.f32 %v2451_v49, %v2113_v45  ;;  %v2453_v51 = vpop.f32.mrb[13].mxu0 }
 0x27b   :  { %v2454_v52 = vpop.f32.mrb[14].mxu0 }
 0x27c   :  { %2569 = vst.msk [vmem:[%s4316_s3 + $0x30] sm:$0xff] %vm2562_vm1, %v2760_v50  ;;  %v2761_v53 = vadd.f32 %v2454_v52, %v2116_v47  ;;  %v2456_v54 = vpop.f32.mrb[15].mxu0 }
 0x27d   :  { %v2121_v55 = vpop.f32.mrb[16].mxu1 }
 0x27e   :  { %2570 = vst.msk [vmem:[%s4316_s3 + $0x38] sm:$0xff] %vm2562_vm1, %v2761_v53  ;;  %v2123_v0 = vpop.f32.mrb[17].mxu1 }
 0x27f   :  { %v2124_v56 = vpop.f32.mrb[18].mxu1 }
 0x280   :  { %v2126_v57 = vpop.f32.mrb[19].mxu1 }
 0x281   :  { %v2459_v58 = vpop.f32.mrb[16].mxu0 }
 0x282   :  { %v2762_v59 = vadd.f32 %v2459_v58, %v2121_v55  ;;  %v2461_v60 = vpop.f32.mrb[17].mxu0 }
 0x283   :  { %v2462_v61 = vpop.f32.mrb[18].mxu0 }
 0x284   :  { %2571 = vst.msk [vmem:[%s4316_s3 + $0x40] sm:$0xff] %vm2562_vm1, %v2762_v59  ;;  %v2763_v62 = vadd.f32 %v2462_v61, %v2124_v56  ;;  %v2464_v63 = vpop.f32.mrb[19].mxu0 }
 0x285   :  { %v2129_v1 = vpop.f32.mrb[20].mxu1 }
 0x286   :  { %2572 = vst.msk [vmem:[%s4316_s3 + $0x48] sm:$0xff] %vm2562_vm1, %v2763_v62  ;;  %v2131_v4 = vpop.f32.mrb[21].mxu1 }
 0x287   :  { %v2132_v5 = vpop.f32.mrb[22].mxu1 }
 0x288   :  { %v2134_v6 = vpop.f32.mrb[23].mxu1 }
 0x289   :  { %v2467_v8 = vpop.f32.mrb[20].mxu0 }
 0x28a   :  { %v2764_v9 = vadd.f32 %v2467_v8, %v2129_v1  ;;  %v2469_v10 = vpop.f32.mrb[21].mxu0 }
 0x28b   :  { %v2470_v11 = vpop.f32.mrb[22].mxu0 }
 0x28c   :  { %2573 = vst.msk [vmem:[%s4316_s3 + $0x50] sm:$0xff] %vm2562_vm1, %v2764_v9  ;;  %v2765_v12 = vadd.f32 %v2470_v11, %v2132_v5  ;;  %v2472_v15 = vpop.f32.mrb[23].mxu0 }
 0x28d   :  { %v2137_v16 = vpop.f32.mrb[24].mxu1 }
 0x28e   :  { %2574 = vst.msk [vmem:[%s4316_s3 + $0x58] sm:$0xff] %vm2562_vm1, %v2765_v12  ;;  %v2139_v17 = vpop.f32.mrb[25].mxu1 }
 0x28f   :  { %v2140_v18 = vpop.f32.mrb[26].mxu1 }
 0x290   :  { %v2142_v2 = vpop.f32.mrb[27].mxu1 }
 0x291   :  { %v2475_v3 = vpop.f32.mrb[24].mxu0 }
 0x292   :  { %v2766_v7 = vadd.f32 %v2475_v3, %v2137_v16  ;;  %v2477_v20 = vpop.f32.mrb[25].mxu0 }
 0x293   :  { %v2478_v21 = vpop.f32.mrb[26].mxu0 }
 0x294   :  { %2575 = vst.msk [vmem:[%s4316_s3 + $0x60] sm:$0xff] %vm2562_vm1, %v2766_v7  ;;  %v2767_v22 = vadd.f32 %v2478_v21, %v2140_v18  ;;  %v2480_v23 = vpop.f32.mrb[27].mxu0 }
 0x295   :  { %v2145_v24 = vpop.f32.mrb[28].mxu1 }
 0x296   :  { %2576 = vst.msk [vmem:[%s4316_s3 + $0x68] sm:$0xff] %vm2562_vm1, %v2767_v22  ;;  %v2147_v25 = vpop.f32.mrb[29].mxu1 }
 0x297   :  { %v2148_v26 = vpop.f32.mrb[30].mxu1 }
 0x298   :  { %v2150_v13 = vpop.f32.mrb[31].mxu1 }
 0x299   :  { %v2483_v14 = vpop.f32.mrb[28].mxu0 }
 0x29a   :  { %v2768_v19 = vadd.f32 %v2483_v14, %v2145_v24  ;;  %v2485_v27 = vpop.f32.mrb[29].mxu0 }
 0x29b   :  { %v2486_v28 = vpop.f32.mrb[30].mxu0 }
 0x29c   :  { %2577 = vst.msk [vmem:[%s4316_s3 + $0x70] sm:$0xff] %vm2562_vm1, %v2768_v19  ;;  %v2769_v29 = vadd.f32 %v2486_v28, %v2148_v26  ;;  %v2488_v30 = vpop.f32.mrb[31].mxu0 }
 0x29d   :  { %v2153_v31 = vpop.f32.mrb[32].mxu1 }
 0x29e   :  { %2578 = vst.msk [vmem:[%s4316_s3 + $0x78] sm:$0xff] %vm2562_vm1, %v2769_v29  ;;  %v2155_v32 = vpop.f32.mrb[33].mxu1 }
 0x29f   :  { %v2156_v33 = vpop.f32.mrb[34].mxu1 }
 0x2a0   :  { %v2158_v34 = vpop.f32.mrb[35].mxu1 }
 0x2a1   :  { %v2491_v35 = vpop.f32.mrb[32].mxu0 }
 0x2a2   :  { %v2770_v36 = vadd.f32 %v2491_v35, %v2153_v31  ;;  %v2493_v37 = vpop.f32.mrb[33].mxu0 }
 0x2a3   :  { %v2494_v38 = vpop.f32.mrb[34].mxu0 }
 0x2a4   :  { %2579 = vst.msk [vmem:[%s4316_s3 + $0x80] sm:$0xff] %vm2562_vm1, %v2770_v36  ;;  %v2771_v39 = vadd.f32 %v2494_v38, %v2156_v33  ;;  %v2496_v40 = vpop.f32.mrb[35].mxu0 }
 0x2a5   :  { %v2161_v41 = vpop.f32.mrb[36].mxu1 }
 0x2a6   :  { %2580 = vst.msk [vmem:[%s4316_s3 + $0x88] sm:$0xff] %vm2562_vm1, %v2771_v39  ;;  %v2163_v42 = vpop.f32.mrb[37].mxu1 }
 0x2a7   :  { %v2164_v43 = vpop.f32.mrb[38].mxu1 }
 0x2a8   :  { %v2166_v44 = vpop.f32.mrb[39].mxu1 }
 0x2a9   :  { %v2499_v45 = vpop.f32.mrb[36].mxu0 }
 0x2aa   :  { %v2772_v46 = vadd.f32 %v2499_v45, %v2161_v41  ;;  %v2501_v47 = vpop.f32.mrb[37].mxu0 }
 0x2ab   :  { %v2502_v48 = vpop.f32.mrb[38].mxu0 }
 0x2ac   :  { %2581 = vst.msk [vmem:[%s4316_s3 + $0x90] sm:$0xff] %vm2562_vm1, %v2772_v46  ;;  %v2773_v49 = vadd.f32 %v2502_v48, %v2164_v43  ;;  %v2504_v50 = vpop.f32.mrb[39].mxu0 }
 0x2ad   :  { %v2169_v51 = vpop.f32.mrb[40].mxu1 }
 0x2ae   :  { %2582 = vst.msk [vmem:[%s4316_s3 + $0x98] sm:$0xff] %vm2562_vm1, %v2773_v49  ;;  %v2171_v52 = vpop.f32.mrb[41].mxu1 }
 0x2af   :  { %v2172_v53 = vpop.f32.mrb[42].mxu1 }
 0x2b0   :  { %v2174_v54 = vpop.f32.mrb[43].mxu1 }
 0x2b1   :  { %v2507_v55 = vpop.f32.mrb[40].mxu0 }
 0x2b2   :  { %v2774_v0 = vadd.f32 %v2507_v55, %v2169_v51  ;;  %v2509_v56 = vpop.f32.mrb[41].mxu0 }
 0x2b3   :  { %v2510_v57 = vpop.f32.mrb[42].mxu0 }
 0x2b4   :  { %2583 = vst.msk [vmem:[%s4316_s3 + $0xa0] sm:$0xff] %vm2562_vm1, %v2774_v0  ;;  %v2775_v58 = vadd.f32 %v2510_v57, %v2172_v53  ;;  %v2512_v59 = vpop.f32.mrb[43].mxu0 }
 0x2b5   :  { %v2177_v60 = vpop.f32.mrb[44].mxu1 }
 0x2b6   :  { %2584 = vst.msk [vmem:[%s4316_s3 + $0xa8] sm:$0xff] %vm2562_vm1, %v2775_v58  ;;  %v2179_v61 = vpop.f32.mrb[45].mxu1 }
 0x2b7   :  { %v2180_v62 = vpop.f32.mrb[46].mxu1 }
 0x2b8   :  { %v2182_v63 = vpop.f32.mrb[47].mxu1 }
 0x2b9   :  { %v2515_v1 = vpop.f32.mrb[44].mxu0 }
 0x2ba   :  { %v2776_v4 = vadd.f32 %v2515_v1, %v2177_v60  ;;  %v2517_v5 = vpop.f32.mrb[45].mxu0 }
 0x2bb   :  { %v2518_v6 = vpop.f32.mrb[46].mxu0 }
 0x2bc   :  { %2585 = vst.msk [vmem:[%s4316_s3 + $0xb0] sm:$0xff] %vm2562_vm1, %v2776_v4  ;;  %v2777_v8 = vadd.f32 %v2518_v6, %v2180_v62  ;;  %v2520_v9 = vpop.f32.mrb[47].mxu0 }
 0x2bd   :  { %v2185_v10 = vpop.f32.mrb[48].mxu1 }
 0x2be   :  { %2586 = vst.msk [vmem:[%s4316_s3 + $0xb8] sm:$0xff] %vm2562_vm1, %v2777_v8  ;;  %v2187_v11 = vpop.f32.mrb[49].mxu1 }
 0x2bf   :  { %v2188_v12 = vpop.f32.mrb[50].mxu1 }
 0x2c0   :  { %v2190_v15 = vpop.f32.mrb[51].mxu1 }
 0x2c1   :  { %v2523_v16 = vpop.f32.mrb[48].mxu0 }
 0x2c2   :  { %v2778_v17 = vadd.f32 %v2523_v16, %v2185_v10  ;;  %v2525_v18 = vpop.f32.mrb[49].mxu0 }
 0x2c3   :  { %v2526_v2 = vpop.f32.mrb[50].mxu0 }
 0x2c4   :  { %2587 = vst.msk [vmem:[%s4316_s3 + $0xc0] sm:$0xff] %vm2562_vm1, %v2778_v17  ;;  %v2779_v3 = vadd.f32 %v2526_v2, %v2188_v12  ;;  %v2528_v7 = vpop.f32.mrb[51].mxu0 }
 0x2c5   :  { %v2193_v20 = vpop.f32.mrb[52].mxu1 }
 0x2c6   :  { %2588 = vst.msk [vmem:[%s4316_s3 + $0xc8] sm:$0xff] %vm2562_vm1, %v2779_v3  ;;  %v2195_v21 = vpop.f32.mrb[53].mxu1 }
 0x2c7   :  { %v2196_v22 = vpop.f32.mrb[54].mxu1 }
 0x2c8   :  { %v2198_v23 = vpop.f32.mrb[55].mxu1 }
 0x2c9   :  { %v2531_v24 = vpop.f32.mrb[52].mxu0 }
 0x2ca   :  { %v2780_v25 = vadd.f32 %v2531_v24, %v2193_v20  ;;  %v2533_v26 = vpop.f32.mrb[53].mxu0 }
 0x2cb   :  { %v2534_v13 = vpop.f32.mrb[54].mxu0 }
 0x2cc   :  { %2589 = vst.msk [vmem:[%s4316_s3 + $0xd0] sm:$0xff] %vm2562_vm1, %v2780_v25  ;;  %v2781_v14 = vadd.f32 %v2534_v13, %v2196_v22  ;;  %v2536_v19 = vpop.f32.mrb[55].mxu0 }
 0x2cd   :  { %v2201_v27 = vpop.f32.mrb[56].mxu1 }
 0x2ce   :  { %2590 = vst.msk [vmem:[%s4316_s3 + $0xd8] sm:$0xff] %vm2562_vm1, %v2781_v14  ;;  %v2203_v28 = vpop.f32.mrb[57].mxu1 }
 0x2cf   :  { %v2204_v29 = vpop.f32.mrb[58].mxu1 }
 0x2d0   :  { %v2206_v30 = vpop.f32.mrb[59].mxu1 }
 0x2d1   :  { %v2539_v31 = vpop.f32.mrb[56].mxu0 }
 0x2d2   :  { %v2782_v32 = vadd.f32 %v2539_v31, %v2201_v27  ;;  %v2541_v33 = vpop.f32.mrb[57].mxu0 }
 0x2d3   :  { %v2542_v34 = vpop.f32.mrb[58].mxu0 }
 0x2d4   :  { %2591 = vst.msk [vmem:[%s4316_s3 + $0xe0] sm:$0xff] %vm2562_vm1, %v2782_v32  ;;  %v2783_v35 = vadd.f32 %v2542_v34, %v2204_v29  ;;  %v2544_v36 = vpop.f32.mrb[59].mxu0 }
 0x2d5   :  { %v2209_v37 = vpop.f32.mrb[60].mxu1 }
 0x2d6   :  { %2592 = vst.msk [vmem:[%s4316_s3 + $0xe8] sm:$0xff] %vm2562_vm1, %v2783_v35  ;;  %v2211_v38 = vpop.f32.mrb[61].mxu1 }
 0x2d7   :  { %v2212_v39 = vpop.f32.mrb[62].mxu1 }
 0x2d8   :  { %v2214_v40 = vpop.f32.mrb[63].mxu1 }
 0x2d9   :  { %v2547_v41 = vpop.f32.mrb[60].mxu0 }
 0x2da   :  { %v2784_v42 = vadd.f32 %v2547_v41, %v2209_v37  ;;  %v2549_v43 = vpop.f32.mrb[61].mxu0 }
 0x2db   :  { %v2550_v44 = vpop.f32.mrb[62].mxu0 }
 0x2dc   :  { %2593 = vst.msk [vmem:[%s4316_s3 + $0xf0] sm:$0xff] %vm2562_vm1, %v2784_v42  ;;  %v2785_v45 = vadd.f32 %v2550_v44, %v2212_v39  ;;  %v2552_v46 = vpop.f32.mrb[63].mxu0 }
 0x2dd   :  { %v2217_v47 = vpop.f32.mrb[64].mxu1 }
 0x2de   :  { %2594 = vst.msk [vmem:[%s4316_s3 + $0xf8] sm:$0xff] %vm2562_vm1, %v2785_v45  ;;  %v2219_v48 = vpop.f32.mrb[65].mxu1 }
 0x2df   :  { %v2220_v49 = vpop.f32.mrb[66].mxu1 }
 0x2e0   :  { %v2222_v50 = vpop.f32.mrb[67].mxu1 }
 0x2e1   :  { %v2555_v51 = vpop.f32.mrb[64].mxu0 }
 0x2e2   :  { %v2786_v52 = vadd.f32 %v2555_v51, %v2217_v47  ;;  %v2557_v53 = vpop.f32.mrb[65].mxu0 }
 0x2e3   :  { %v2558_v54 = vpop.f32.mrb[66].mxu0 }
 0x2e4   :  { %2595 = vst.msk [vmem:[%s4316_s3 + $0x100] sm:$0xff] %vm2562_vm1, %v2786_v52  ;;  %v2787_v55 = vadd.f32 %v2558_v54, %v2220_v49  ;;  %v2560_v0 = vpop.f32.mrb[67].mxu0 }
 0x2e6   :  { %2596 = vst.msk [vmem:[%s4316_s3 + $0x108] sm:$0xff] %vm2562_vm1, %v2787_v55 }

</bundles_post_ra>
